<compile_context>
chip_gen: v7x
topology: tpu7x:2x2x1
jax: 0.10.0
libtpu: 0.0.40
codegen_flags: <defaults>
</compile_context>

<pallas_src>
import math

import jax
import jax.numpy as jnp
from jax import lax
from jax.experimental import pallas as pl
from jax.experimental.pallas import tpu as pltpu

# ---- small, module-consistent hyperparameters -------------------------------
INPUT_FEATURES = 16    # d_model (must be divisible by NHEAD)
OUTPUT_FEATURES = 8
NHEAD = 2
D_HID = 32
NLAYERS = 2
SEQ_LENGTH = 8         # ctor arg; = src.shape[1] (flatten/linear constraint)
T_LEN = 4              # src.shape[0]: axis attention / causal mask / pos-enc run over
LN_EPS = 1e-5
NEG_INF = -1e30        # stands in for float('-inf') in the causal mask

HEAD_DIM = INPUT_FEATURES // NHEAD
QT = SEQ_LENGTH * T_LEN           # fused (t, q) row count        = 32
HQT = NHEAD * QT                  # head-stacked row count        = 64
QO = SEQ_LENGTH * OUTPUT_FEATURES # flattened-selection lane count = 64

# ---- packed-operand layout (all row offsets used for slicing are 8-aligned) --
# cst: (CST_ROWS, CST_COLS) f32 constants
R_PE, R_MASK, R_SEL, R_G, R_FOLD, R_RED, R_FCB = 0, 32, 96, 128, 144, 208, 216
CST_ROWS, CST_COLS = 224, 64
# wmat: (NLAYERS, WM_ROWS, WM_COLS) f32 per-layer matrices (pre-transposed)
WM_IN, WM_OUT, WM_F1, WM_F2 = 0, 16, 32, 48
WM_ROWS, WM_COLS = 80, 48
# wvec: (NLAYERS, WV_ROWS, WM_COLS) f32 per-layer biases / LayerNorm params
WV_INB, WV_OUTB, WV_F1B, WV_F2B, WV_LN1W, WV_LN1B, WV_LN2W, WV_LN2B = range(8)
WV_ROWS = 8


# ---- shared math helpers (used both in-kernel and in the JAX reference) ------
def _layernorm(x, g, b):
    mu = jnp.mean(x, axis=-1, keepdims=True)
    var = jnp.mean((x - mu) ** 2, axis=-1, keepdims=True)
    return (x - mu) * lax.rsqrt(var + LN_EPS) * g + b


def make_pos_encoding(t_len, d_model):
    position = jnp.arange(t_len, dtype=jnp.float32)[:, None]
    div_term = jnp.exp(jnp.arange(0, d_model, 2, dtype=jnp.float32)
                       * (-math.log(10000.0) / d_model))
    pe = jnp.zeros((t_len, d_model), jnp.float32)
    pe = pe.at[:, 0::2].set(jnp.sin(position * div_term))
    pe = pe.at[:, 1::2].set(jnp.cos(position * div_term))
    return pe


# ---- Pallas kernel -----------------------------------------------------------
def transformer_kernel(x_ref, cst_ref, wmat_ref, wvec_ref, o_ref):
    E, O, H, Dh, FF = INPUT_FEATURES, OUTPUT_FEATURES, NHEAD, HEAD_DIM, D_HID

    # positional encoding over T (pre-broadcast to the t-major fused rows at init);
    # dropout = identity in eval mode.
    x = x_ref[...] + cst_ref[R_PE:R_PE + QT, 0:E]                        # (QT, E)

    # (head, q)-block-diagonal causal mask over head-stacked rows, precomputed at init.
    mask = cst_ref[R_MASK:R_MASK + HQT, 0:HQT]                           # (HQT, HQT)

    for l in range(NLAYERS):                       # static unroll over encoder layers
        # --- fused multi-head self-attention (post-norm) ---
        w_in = wmat_ref[l, WM_IN:WM_IN + E, 0:3 * E]                     # (E, 3E)
        b_in = wvec_ref[l, WV_INB:WV_INB + 1, 0:3 * E]                   # (1, 3E)
        qkv = jnp.dot(x, w_in, preferred_element_type=jnp.float32) + b_in  # (QT, 3E)

        # stack the H heads along rows -> (HQT, 3*Dh); 1/sqrt(Dh) already folded
        # into the q columns of w_in / b_in at init.
        qkv_s = jnp.concatenate([qkv[:, 0:3 * Dh], qkv[:, 3 * Dh:6 * Dh]], axis=0)
        q_s = qkv_s[:, 0:Dh]
        k_s = qkv_s[:, Dh:2 * Dh]
        v_s = qkv_s[:, 2 * Dh:3 * Dh]

        s = lax.dot_general(q_s, k_s, (((1,), (1,)), ((), ())),
                            preferred_element_type=jnp.float32) + mask   # (HQT, HQT)
        m = jnp.max(s, axis=-1, keepdims=True)
        p_exp = jnp.exp(s - m)
        p = p_exp * pl.reciprocal(jnp.sum(p_exp, axis=-1, keepdims=True), approx=True)
        ctx = jnp.dot(p, v_s, preferred_element_type=jnp.float32)        # (HQT, Dh)

        # out-projection without lane concat: per-head (QT,Dh)@(Dh,E) accumulation.
        w_out = wmat_ref[l, WM_OUT:WM_OUT + E, 0:E]                      # (H*Dh, E)
        attn = wvec_ref[l, WV_OUTB:WV_OUTB + 1, 0:E]                     # (1, E) bias
        for h in range(H):                          # static unroll over heads
            attn = attn + jnp.dot(ctx[h * QT:(h + 1) * QT, :],
                                  w_out[h * Dh:(h + 1) * Dh, :],
                                  preferred_element_type=jnp.float32)
        x = _layernorm(x + attn,
                       wvec_ref[l, WV_LN1W:WV_LN1W + 1, 0:E],
                       wvec_ref[l, WV_LN1B:WV_LN1B + 1, 0:E])

        # --- feed-forward (ReLU) ---
        w1 = wmat_ref[l, WM_F1:WM_F1 + E, 0:FF]                          # (E, FF)
        b1 = wvec_ref[l, WV_F1B:WV_F1B + 1, 0:FF]
        h1 = jnp.maximum(jnp.dot(x, w1, preferred_element_type=jnp.float32) + b1, 0.0)
        w2 = wmat_ref[l, WM_F2:WM_F2 + FF, 0:E]                          # (FF, E)
        b2 = wvec_ref[l, WV_F2B:WV_F2B + 1, 0:E]
        z = jnp.dot(h1, w2, preferred_element_type=jnp.float32) + b2
        x = _layernorm(x + z,
                       wvec_ref[l, WV_LN2W:WV_LN2W + 1, 0:E],
                       wvec_ref[l, WV_LN2B:WV_LN2B + 1, 0:E])

    # --- flatten(dims 1,2) + final Linear, t-major rows, no in-kernel reshape ---
    #   out = red @ ((x @ g) * sel) @ fold + fc_b
    # where g[e, q*O+o] = fc_w[o, q*E+e], sel selects the q-matching lane block per row,
    # fold sums matching lane groups, red sums the Q rows of each t-group.
    g = cst_ref[R_G:R_G + E, 0:QO]                                       # (E, QO)
    sel = cst_ref[R_SEL:R_SEL + QT, 0:QO]                                # (QT, QO)
    fold = cst_ref[R_FOLD:R_FOLD + QO, 0:OUTPUT_FEATURES]                # (QO, O)
    red = cst_ref[R_RED:R_RED + T_LEN, 0:QT]                             # (T, QT)
    fcb = cst_ref[R_FCB:R_FCB + 1, 0:OUTPUT_FEATURES]                    # (1, O)

    hp = lax.Precision.HIGHEST   # tiny matmuls; keep the final head exact-ish
    p_full = jnp.dot(x, g, preferred_element_type=jnp.float32, precision=hp) * sel
    y = jnp.dot(p_full, fold, preferred_element_type=jnp.float32, precision=hp)
    o_ref[...] = jnp.dot(red, y, preferred_element_type=jnp.float32, precision=hp) + fcb


# ---- one-time operand preparation (init-time, NOT per call) -------------------
def prepare_operands(params):
    E, O, H, Dh = INPUT_FEATURES, OUTPUT_FEATURES, NHEAD, HEAD_DIM
    Q, T, FF, L = SEQ_LENGTH, T_LEN, D_HID, NLAYERS
    scale = 1.0 / math.sqrt(Dh)

    wmat = jnp.zeros((L, WM_ROWS, WM_COLS), jnp.float32)
    wvec = jnp.zeros((L, WV_ROWS, WM_COLS), jnp.float32)
    for l in range(L):
        inw, inb = params["in_w"][l], params["in_b"][l]          # (3E, E), (3E,)
        wq, wk, wv = inw[:E], inw[E:2 * E], inw[2 * E:]
        bq, bk, bv = inb[:E], inb[E:2 * E], inb[2 * E:]
        cols, bvals = [], []
        for h in range(H):
            sl = slice(h * Dh, (h + 1) * Dh)
            # per-head column blocks [q | k | v]; attention scale folded into q.
            cols += [(wq[sl] * scale).T, wk[sl].T, wv[sl].T]     # each (E, Dh)
            bvals += [bq[sl] * scale, bk[sl], bv[sl]]
        w_in_t = jnp.concatenate(cols, axis=1)                   # (E, 3E)
        b_in = jnp.concatenate(bvals)                            # (3E,)

        wmat = wmat.at[l, WM_IN:WM_IN + E, 0:3 * E].set(w_in_t)
        wmat = wmat.at[l, WM_OUT:WM_OUT + E, 0:E].set(params["out_w"][l].T)
        wmat = wmat.at[l, WM_F1:WM_F1 + E, 0:FF].set(params["f1_w"][l].T)
        wmat = wmat.at[l, WM_F2:WM_F2 + FF, 0:E].set(params["f2_w"][l].T)

        wvec = wvec.at[l, WV_INB, 0:3 * E].set(b_in)
        wvec = wvec.at[l, WV_OUTB, 0:E].set(params["out_b"][l])
        wvec = wvec.at[l, WV_F1B, 0:FF].set(params["f1_b"][l])
        wvec = wvec.at[l, WV_F2B, 0:E].set(params["f2_b"][l])
        wvec = wvec.at[l, WV_LN1W, 0:E].set(params["ln1_w"][l])
        wvec = wvec.at[l, WV_LN1B, 0:E].set(params["ln1_b"][l])
        wvec = wvec.at[l, WV_LN2W, 0:E].set(params["ln2_w"][l])
        wvec = wvec.at[l, WV_LN2B, 0:E].set(params["ln2_b"][l])

    # positional encoding broadcast over t-major fused rows (row = t*Q + q).
    pe2d = jnp.repeat(make_pos_encoding(T, E), Q, axis=0)        # (QT, E)

    # (head, q)-block-diagonal causal mask over head-stacked rows i = h*QT + t*Q + q.
    idx = jnp.arange(HQT)
    h_i, r_i = idx // QT, idx % QT
    t_i, q_i = r_i // Q, r_i % Q
    allowed = ((h_i[:, None] == h_i[None, :]) &
               (q_i[:, None] == q_i[None, :]) &
               (t_i[None, :] <= t_i[:, None]))
    mask = jnp.where(allowed, 0.0, NEG_INF).astype(jnp.float32)  # (HQT, HQT)

    # final flatten + Linear constants: out = red @ ((x @ g) * sel) @ fold + fc_b
    r = jnp.arange(QT)
    c = jnp.arange(QO)
    sel = ((r[:, None] % Q) == (c[None, :] // O)).astype(jnp.float32)        # (QT, QO)
    g = params["fc_w"].reshape(O, Q, E).transpose(2, 1, 0).reshape(E, QO)    # (E, QO)
    fold = ((c[:, None] % O) == jnp.arange(O)[None, :]).astype(jnp.float32)  # (QO, O)
    red = ((r[None, :] // Q) == jnp.arange(T)[:, None]).astype(jnp.float32)  # (T, QT)

    cst = jnp.zeros((CST_ROWS, CST_COLS), jnp.float32)
    cst = cst.at[R_PE:R_PE + QT, 0:E].set(pe2d)
    cst = cst.at[R_MASK:R_MASK + HQT, 0:HQT].set(mask)
    cst = cst.at[R_SEL:R_SEL + QT, 0:QO].set(sel)
    cst = cst.at[R_G:R_G + E, 0:QO].set(g)
    cst = cst.at[R_FOLD:R_FOLD + QO, 0:O].set(fold)
    cst = cst.at[R_RED:R_RED + T, 0:QT].set(red)
    cst = cst.at[R_FCB, 0:O].set(params["fc_b"])
    return cst, wmat, wvec


# ---- wrapper -----------------------------------------------------------------
def transformer_forward(src, operands):
    cst, wmat, wvec = operands
    T, Q, E = src.shape
    assert Q == SEQ_LENGTH and E == INPUT_FEATURES
    # t-major fused rows: row = t*Q + q  (plain contiguous reshape, no transpose)
    x2d = src.reshape(T * Q, E)
    vmem = pl.BlockSpec(memory_space=pltpu.MemorySpace.VMEM)
    return pl.pallas_call(
        transformer_kernel,
        out_shape=jax.ShapeDtypeStruct((T, OUTPUT_FEATURES), jnp.float32),
        in_specs=[vmem, vmem, vmem, vmem],
        out_specs=vmem,
    )(x2d, cst, wmat, wvec)


# ---- deterministic synthetic parameters --------------------------------------
def init_params(key):
    E, O, F, L, Q = INPUT_FEATURES, OUTPUT_FEATURES, D_HID, NLAYERS, SEQ_LENGTH
    ks = jax.random.split(key, 8)

    def u(k, shape, fan_in):
        bound = 1.0 / math.sqrt(fan_in)
        return jax.random.uniform(k, shape, jnp.float32, -bound, bound)

    return dict(
        in_w=u(ks[0], (L, 3 * E, E), E),
        in_b=jnp.zeros((L, 3 * E), jnp.float32),
        out_w=u(ks[1], (L, E, E), E),
        out_b=jnp.zeros((L, E), jnp.float32),
        ln1_w=jnp.ones((L, E), jnp.float32),
        ln1_b=jnp.zeros((L, E), jnp.float32),
        ln2_w=jnp.ones((L, E), jnp.float32),
        ln2_b=jnp.zeros((L, E), jnp.float32),
        f1_w=u(ks[2], (L, F, E), E),
        f1_b=u(ks[3], (L, F), E),
        f2_w=u(ks[4], (L, E, F), F),
        f2_b=u(ks[5], (L, E), F),
        fc_w=u(ks[6], (O, E * Q), E * Q),
        fc_b=u(ks[7], (O,), E * Q),
    )


# ---- pure-JAX reference (PyTorch layout) for validation -----------------------
def reference_forward(src, params):
    T, Q, E = src.shape
    H, Dh, L = NHEAD, INPUT_FEATURES // NHEAD, NLAYERS
    scale = 1.0 / math.sqrt(Dh)
    pe = make_pos_encoding(T, E)
    x = src + pe[:, None, :]
    row = jnp.arange(T)[:, None]
    col = jnp.arange(T)[None, :]
    mask = jnp.where(col > row, NEG_INF, 0.0).astype(jnp.float32)
    for l in range(L):
        qkv = jnp.einsum("tqe,fe->tqf", x, params["in_w"][l]) + params["in_b"][l]
        q = qkv[..., :E].reshape(T, Q, H, Dh)
        k = qkv[..., E:2 * E].reshape(T, Q, H, Dh)
        v = qkv[..., 2 * E:].reshape(T, Q, H, Dh)
        s = jnp.einsum("tqhd,sqhd->qhts", q, k) * scale + mask[None, None]
        p = jax.nn.softmax(s, axis=-1)
        ao = jnp.einsum("qhts,sqhd->tqhd", p, v).reshape(T, Q, E)
        ao = jnp.einsum("tqe,fe->tqf", ao, params["out_w"][l]) + params["out_b"][l]
        x = _layernorm(x + ao, params["ln1_w"][l], params["ln1_b"][l])
        h1 = jax.nn.relu(jnp.einsum("tqe,fe->tqf", x, params["f1_w"][l]) + params["f1_b"][l])
        z = jnp.einsum("tqf,ef->tqe", h1, params["f2_w"][l]) + params["f2_b"][l]
        x = _layernorm(x + z, params["ln2_w"][l], params["ln2_b"][l])
    flat = x.reshape(T, Q * E)
    return flat @ params["fc_w"].T + params["fc_b"]


if __name__ == "__main__":
    key = jax.random.PRNGKey(0)
    kp, kx = jax.random.split(key)
    params = init_params(kp)
    operands = prepare_operands(params)        # one-time weight/constant relayout
    src = jax.random.normal(kx, (T_LEN, SEQ_LENGTH, INPUT_FEATURES), jnp.float32)

    fwd = jax.jit(transformer_forward)
    out = jax.block_until_ready(fwd(src, operands))

    assert out.shape == (T_LEN, OUTPUT_FEATURES), out.shape
    assert bool(jnp.all(jnp.isfinite(out)))

    ref = reference_forward(src, params)
    # Default (bf16-MXU) matmul precision in the encoder body plus the approx softmax
    # reciprocal -> compare at a correspondingly relaxed tolerance.
    if not jnp.allclose(out, ref, rtol=2e-2, atol=2e-2):
        raise AssertionError(
            f"mismatch vs reference: max abs diff = {float(jnp.max(jnp.abs(out - ref)))}")

    print("KERNEL_OK")
</pallas_src>

<mosaic_0001>
module attributes {stable_mosaic.version = 11 : i64} {
  func.func @transformer_kernel(%arg0: memref<32x16xf32, #tpu.memory_space<vmem>>, %arg1: memref<224x64xf32, #tpu.memory_space<vmem>>, %arg2: memref<2x80x48xf32, #tpu.memory_space<vmem>>, %arg3: memref<2x8x48xf32, #tpu.memory_space<vmem>>, %arg4: memref<4x8xf32, #tpu.memory_space<vmem>>) attributes {dimension_semantics = [], scalar_prefetch = 0 : i64, scratch_operands = 0 : i64, tpu.core_type = #tpu.core_type<tc>} {
    %c0 = arith.constant 0 : index
    %c0_0 = arith.constant 0 : index
    %0 = vector.load %arg0[%c0, %c0_0] : memref<32x16xf32, #tpu.memory_space<vmem>>, vector<32x16xf32>
    %c0_1 = arith.constant 0 : index
    %c0_2 = arith.constant 0 : index
    %1 = vector.load %arg1[%c0_1, %c0_2] : memref<224x64xf32, #tpu.memory_space<vmem>>, vector<32x16xf32>
    %2 = arith.addf %0, %1 : vector<32x16xf32>
    %c32 = arith.constant 32 : index
    %c0_3 = arith.constant 0 : index
    %3 = vector.load %arg1[%c32, %c0_3] : memref<224x64xf32, #tpu.memory_space<vmem>>, vector<64x64xf32>
    %c0_4 = arith.constant 0 : index
    %c0_5 = arith.constant 0 : index
    %c0_6 = arith.constant 0 : index
    %4 = vector.load %arg2[%c0_4, %c0_5, %c0_6] : memref<2x80x48xf32, #tpu.memory_space<vmem>>, vector<1x16x48xf32>
    %5 = vector.shape_cast %4 : vector<1x16x48xf32> to vector<16x48xf32>
    %c0_7 = arith.constant 0 : index
    %c0_8 = arith.constant 0 : index
    %c0_9 = arith.constant 0 : index
    %6 = vector.load %arg3[%c0_7, %c0_8, %c0_9] : memref<2x8x48xf32, #tpu.memory_space<vmem>>, vector<1x1x48xf32>
    %7 = vector.shape_cast %6 : vector<1x1x48xf32> to vector<1x48xf32>
    %cst = arith.constant dense<0.000000e+00> : vector<32x48xf32>
    %8 = tpu.matmul %2, %5, %cst {dimension_numbers = #tpu.dot_dimension_numbers<[1], [0], [0], [1], [0, 0, 1, 1], [], []>} : vector<32x16xf32>, vector<16x48xf32>, vector<32x48xf32> -> vector<32x48xf32>
    %9 = vector.broadcast %7 : vector<1x48xf32> to vector<32x48xf32>
    %10 = arith.addf %8, %9 : vector<32x48xf32>
    %11 = vector.extract_strided_slice %10 {offsets = [0, 0], sizes = [32, 24], strides = [1, 1]} : vector<32x48xf32> to vector<32x24xf32>
    %12 = vector.extract_strided_slice %10 {offsets = [0, 24], sizes = [32, 24], strides = [1, 1]} : vector<32x48xf32> to vector<32x24xf32>
    %13 = tpu.concatenate %11, %12 in 0 : vector<32x24xf32>, vector<32x24xf32> -> vector<64x24xf32>
    %14 = vector.extract_strided_slice %13 {offsets = [0, 0], sizes = [64, 8], strides = [1, 1]} : vector<64x24xf32> to vector<64x8xf32>
    %15 = vector.extract_strided_slice %13 {offsets = [0, 8], sizes = [64, 8], strides = [1, 1]} : vector<64x24xf32> to vector<64x8xf32>
    %16 = vector.extract_strided_slice %13 {offsets = [0, 16], sizes = [64, 8], strides = [1, 1]} : vector<64x24xf32> to vector<64x8xf32>
    %cst_10 = arith.constant dense<0.000000e+00> : vector<64x64xf32>
    %17 = tpu.matmul %14, %15, %cst_10 {dimension_numbers = #tpu.dot_dimension_numbers<[1], [1], [0], [0], [0, 0, 1, 0], [], []>} : vector<64x8xf32>, vector<64x8xf32>, vector<64x64xf32> -> vector<64x64xf32>
    %18 = arith.addf %17, %3 : vector<64x64xf32>
    %cst_11 = arith.constant dense<0xFF800000> : vector<64xf32>
    %19 = vector.multi_reduction <maximumf>, %18, %cst_11 [1] : vector<64x64xf32> to vector<64xf32>
    %20 = vector.shape_cast %19 : vector<64xf32> to vector<64x1xf32>
    %21 = vector.broadcast %20 : vector<64x1xf32> to vector<64x64xf32>
    %22 = arith.subf %18, %21 : vector<64x64xf32>
    %23 = math.exp %22 : vector<64x64xf32>
    %cst_12 = arith.constant dense<0.000000e+00> : vector<64xf32>
    %24 = vector.multi_reduction <add>, %23, %cst_12 [1] : vector<64x64xf32> to vector<64xf32>
    %25 = vector.shape_cast %24 : vector<64xf32> to vector<64x1xf32>
    %26 = tpu.reciprocal %25 {approx = true} : vector<64x1xf32> -> vector<64x1xf32>
    %27 = vector.broadcast %26 : vector<64x1xf32> to vector<64x64xf32>
    %28 = arith.mulf %23, %27 : vector<64x64xf32>
    %cst_13 = arith.constant dense<0.000000e+00> : vector<64x8xf32>
    %29 = tpu.matmul %28, %16, %cst_13 {dimension_numbers = #tpu.dot_dimension_numbers<[1], [0], [0], [1], [0, 0, 1, 1], [], []>} : vector<64x64xf32>, vector<64x8xf32>, vector<64x8xf32> -> vector<64x8xf32>
    %c0_14 = arith.constant 0 : index
    %c16 = arith.constant 16 : index
    %c0_15 = arith.constant 0 : index
    %30 = vector.load %arg2[%c0_14, %c16, %c0_15] : memref<2x80x48xf32, #tpu.memory_space<vmem>>, vector<1x16x16xf32>
    %31 = vector.shape_cast %30 : vector<1x16x16xf32> to vector<16x16xf32>
    %c0_16 = arith.constant 0 : index
    %c1 = arith.constant 1 : index
    %c0_17 = arith.constant 0 : index
    %32 = vector.load %arg3[%c0_16, %c1, %c0_17] : memref<2x8x48xf32, #tpu.memory_space<vmem>>, vector<1x1x16xf32>
    %33 = vector.shape_cast %32 : vector<1x1x16xf32> to vector<1x16xf32>
    %34 = vector.extract_strided_slice %29 {offsets = [0, 0], sizes = [32, 8], strides = [1, 1]} : vector<64x8xf32> to vector<32x8xf32>
    %35 = vector.extract_strided_slice %31 {offsets = [0, 0], sizes = [8, 16], strides = [1, 1]} : vector<16x16xf32> to vector<8x16xf32>
    %cst_18 = arith.constant dense<0.000000e+00> : vector<32x16xf32>
    %36 = tpu.matmul %34, %35, %cst_18 {dimension_numbers = #tpu.dot_dimension_numbers<[1], [0], [0], [1], [0, 0, 1, 1], [], []>} : vector<32x8xf32>, vector<8x16xf32>, vector<32x16xf32> -> vector<32x16xf32>
    %37 = vector.broadcast %33 : vector<1x16xf32> to vector<32x16xf32>
    %38 = arith.addf %37, %36 : vector<32x16xf32>
    %39 = vector.extract_strided_slice %29 {offsets = [32, 0], sizes = [32, 8], strides = [1, 1]} : vector<64x8xf32> to vector<32x8xf32>
    %40 = vector.extract_strided_slice %31 {offsets = [8, 0], sizes = [8, 16], strides = [1, 1]} : vector<16x16xf32> to vector<8x16xf32>
    %cst_19 = arith.constant dense<0.000000e+00> : vector<32x16xf32>
    %41 = tpu.matmul %39, %40, %cst_19 {dimension_numbers = #tpu.dot_dimension_numbers<[1], [0], [0], [1], [0, 0, 1, 1], [], []>} : vector<32x8xf32>, vector<8x16xf32>, vector<32x16xf32> -> vector<32x16xf32>
    %42 = arith.addf %38, %41 : vector<32x16xf32>
    %43 = arith.addf %2, %42 : vector<32x16xf32>
    %c0_20 = arith.constant 0 : index
    %c4 = arith.constant 4 : index
    %c0_21 = arith.constant 0 : index
    %44 = vector.load %arg3[%c0_20, %c4, %c0_21] : memref<2x8x48xf32, #tpu.memory_space<vmem>>, vector<1x1x16xf32>
    %45 = vector.shape_cast %44 : vector<1x1x16xf32> to vector<1x16xf32>
    %c0_22 = arith.constant 0 : index
    %c5 = arith.constant 5 : index
    %c0_23 = arith.constant 0 : index
    %46 = vector.load %arg3[%c0_22, %c5, %c0_23] : memref<2x8x48xf32, #tpu.memory_space<vmem>>, vector<1x1x16xf32>
    %47 = vector.shape_cast %46 : vector<1x1x16xf32> to vector<1x16xf32>
    %cst_24 = arith.constant dense<0.000000e+00> : vector<32xf32>
    %48 = vector.multi_reduction <add>, %43, %cst_24 [1] : vector<32x16xf32> to vector<32xf32>
    %49 = vector.shape_cast %48 : vector<32xf32> to vector<32x1xf32>
    %cst_25 = arith.constant 1.600000e+01 : f32
    %50 = vector.broadcast %cst_25 : f32 to vector<32x1xf32>
    %51 = arith.divf %49, %50 : vector<32x1xf32>
    %52 = vector.broadcast %51 : vector<32x1xf32> to vector<32x16xf32>
    %53 = arith.subf %43, %52 : vector<32x16xf32>
    %54 = arith.mulf %53, %53 : vector<32x16xf32>
    %cst_26 = arith.constant dense<0.000000e+00> : vector<32xf32>
    %55 = vector.multi_reduction <add>, %54, %cst_26 [1] : vector<32x16xf32> to vector<32xf32>
    %56 = vector.shape_cast %55 : vector<32xf32> to vector<32x1xf32>
    %cst_27 = arith.constant 1.600000e+01 : f32
    %57 = vector.broadcast %cst_27 : f32 to vector<32x1xf32>
    %58 = arith.divf %56, %57 : vector<32x1xf32>
    %59 = vector.broadcast %51 : vector<32x1xf32> to vector<32x16xf32>
    %60 = arith.subf %43, %59 : vector<32x16xf32>
    %cst_28 = arith.constant 9.99999974E-6 : f32
    %61 = vector.broadcast %cst_28 : f32 to vector<32x1xf32>
    %62 = arith.addf %58, %61 : vector<32x1xf32>
    %63 = math.rsqrt %62 : vector<32x1xf32>
    %64 = vector.broadcast %63 : vector<32x1xf32> to vector<32x16xf32>
    %65 = arith.mulf %60, %64 : vector<32x16xf32>
    %66 = vector.broadcast %45 : vector<1x16xf32> to vector<32x16xf32>
    %67 = arith.mulf %65, %66 : vector<32x16xf32>
    %68 = vector.broadcast %47 : vector<1x16xf32> to vector<32x16xf32>
    %69 = arith.addf %67, %68 : vector<32x16xf32>
    %c0_29 = arith.constant 0 : index
    %c32_30 = arith.constant 32 : index
    %c0_31 = arith.constant 0 : index
    %70 = vector.load %arg2[%c0_29, %c32_30, %c0_31] : memref<2x80x48xf32, #tpu.memory_space<vmem>>, vector<1x16x32xf32>
    %71 = vector.shape_cast %70 : vector<1x16x32xf32> to vector<16x32xf32>
    %c0_32 = arith.constant 0 : index
    %c2 = arith.constant 2 : index
    %c0_33 = arith.constant 0 : index
    %72 = vector.load %arg3[%c0_32, %c2, %c0_33] : memref<2x8x48xf32, #tpu.memory_space<vmem>>, vector<1x1x32xf32>
    %73 = vector.shape_cast %72 : vector<1x1x32xf32> to vector<1x32xf32>
    %cst_34 = arith.constant dense<0.000000e+00> : vector<32x32xf32>
    %74 = tpu.matmul %69, %71, %cst_34 {dimension_numbers = #tpu.dot_dimension_numbers<[1], [0], [0], [1], [0, 0, 1, 1], [], []>} : vector<32x16xf32>, vector<16x32xf32>, vector<32x32xf32> -> vector<32x32xf32>
    %75 = vector.broadcast %73 : vector<1x32xf32> to vector<32x32xf32>
    %76 = arith.addf %74, %75 : vector<32x32xf32>
    %cst_35 = arith.constant 0.000000e+00 : f32
    %77 = vector.broadcast %cst_35 : f32 to vector<32x32xf32>
    %78 = arith.maximumf %76, %77 : vector<32x32xf32>
    %c0_36 = arith.constant 0 : index
    %c48 = arith.constant 48 : index
    %c0_37 = arith.constant 0 : index
    %79 = vector.load %arg2[%c0_36, %c48, %c0_37] : memref<2x80x48xf32, #tpu.memory_space<vmem>>, vector<1x32x16xf32>
    %80 = vector.shape_cast %79 : vector<1x32x16xf32> to vector<32x16xf32>
    %c0_38 = arith.constant 0 : index
    %c3 = arith.constant 3 : index
    %c0_39 = arith.constant 0 : index
    %81 = vector.load %arg3[%c0_38, %c3, %c0_39] : memref<2x8x48xf32, #tpu.memory_space<vmem>>, vector<1x1x16xf32>
    %82 = vector.shape_cast %81 : vector<1x1x16xf32> to vector<1x16xf32>
    %cst_40 = arith.constant dense<0.000000e+00> : vector<32x16xf32>
    %83 = tpu.matmul %78, %80, %cst_40 {dimension_numbers = #tpu.dot_dimension_numbers<[1], [0], [0], [1], [0, 0, 1, 1], [], []>} : vector<32x32xf32>, vector<32x16xf32>, vector<32x16xf32> -> vector<32x16xf32>
    %84 = vector.broadcast %82 : vector<1x16xf32> to vector<32x16xf32>
    %85 = arith.addf %83, %84 : vector<32x16xf32>
    %86 = arith.addf %69, %85 : vector<32x16xf32>
    %c0_41 = arith.constant 0 : index
    %c6 = arith.constant 6 : index
    %c0_42 = arith.constant 0 : index
    %87 = vector.load %arg3[%c0_41, %c6, %c0_42] : memref<2x8x48xf32, #tpu.memory_space<vmem>>, vector<1x1x16xf32>
    %88 = vector.shape_cast %87 : vector<1x1x16xf32> to vector<1x16xf32>
    %c0_43 = arith.constant 0 : index
    %c7 = arith.constant 7 : index
    %c0_44 = arith.constant 0 : index
    %89 = vector.load %arg3[%c0_43, %c7, %c0_44] : memref<2x8x48xf32, #tpu.memory_space<vmem>>, vector<1x1x16xf32>
    %90 = vector.shape_cast %89 : vector<1x1x16xf32> to vector<1x16xf32>
    %cst_45 = arith.constant dense<0.000000e+00> : vector<32xf32>
    %91 = vector.multi_reduction <add>, %86, %cst_45 [1] : vector<32x16xf32> to vector<32xf32>
    %92 = vector.shape_cast %91 : vector<32xf32> to vector<32x1xf32>
    %cst_46 = arith.constant 1.600000e+01 : f32
    %93 = vector.broadcast %cst_46 : f32 to vector<32x1xf32>
    %94 = arith.divf %92, %93 : vector<32x1xf32>
    %95 = vector.broadcast %94 : vector<32x1xf32> to vector<32x16xf32>
    %96 = arith.subf %86, %95 : vector<32x16xf32>
    %97 = arith.mulf %96, %96 : vector<32x16xf32>
    %cst_47 = arith.constant dense<0.000000e+00> : vector<32xf32>
    %98 = vector.multi_reduction <add>, %97, %cst_47 [1] : vector<32x16xf32> to vector<32xf32>
    %99 = vector.shape_cast %98 : vector<32xf32> to vector<32x1xf32>
    %cst_48 = arith.constant 1.600000e+01 : f32
    %100 = vector.broadcast %cst_48 : f32 to vector<32x1xf32>
    %101 = arith.divf %99, %100 : vector<32x1xf32>
    %102 = vector.broadcast %94 : vector<32x1xf32> to vector<32x16xf32>
    %103 = arith.subf %86, %102 : vector<32x16xf32>
    %cst_49 = arith.constant 9.99999974E-6 : f32
    %104 = vector.broadcast %cst_49 : f32 to vector<32x1xf32>
    %105 = arith.addf %101, %104 : vector<32x1xf32>
    %106 = math.rsqrt %105 : vector<32x1xf32>
    %107 = vector.broadcast %106 : vector<32x1xf32> to vector<32x16xf32>
    %108 = arith.mulf %103, %107 : vector<32x16xf32>
    %109 = vector.broadcast %88 : vector<1x16xf32> to vector<32x16xf32>
    %110 = arith.mulf %108, %109 : vector<32x16xf32>
    %111 = vector.broadcast %90 : vector<1x16xf32> to vector<32x16xf32>
    %112 = arith.addf %110, %111 : vector<32x16xf32>
    %c1_50 = arith.constant 1 : index
    %c0_51 = arith.constant 0 : index
    %c0_52 = arith.constant 0 : index
    %113 = vector.load %arg2[%c1_50, %c0_51, %c0_52] : memref<2x80x48xf32, #tpu.memory_space<vmem>>, vector<1x16x48xf32>
    %114 = vector.shape_cast %113 : vector<1x16x48xf32> to vector<16x48xf32>
    %c1_53 = arith.constant 1 : index
    %c0_54 = arith.constant 0 : index
    %c0_55 = arith.constant 0 : index
    %115 = vector.load %arg3[%c1_53, %c0_54, %c0_55] : memref<2x8x48xf32, #tpu.memory_space<vmem>>, vector<1x1x48xf32>
    %116 = vector.shape_cast %115 : vector<1x1x48xf32> to vector<1x48xf32>
    %cst_56 = arith.constant dense<0.000000e+00> : vector<32x48xf32>
    %117 = tpu.matmul %112, %114, %cst_56 {dimension_numbers = #tpu.dot_dimension_numbers<[1], [0], [0], [1], [0, 0, 1, 1], [], []>} : vector<32x16xf32>, vector<16x48xf32>, vector<32x48xf32> -> vector<32x48xf32>
    %118 = vector.broadcast %116 : vector<1x48xf32> to vector<32x48xf32>
    %119 = arith.addf %117, %118 : vector<32x48xf32>
    %120 = vector.extract_strided_slice %119 {offsets = [0, 0], sizes = [32, 24], strides = [1, 1]} : vector<32x48xf32> to vector<32x24xf32>
    %121 = vector.extract_strided_slice %119 {offsets = [0, 24], sizes = [32, 24], strides = [1, 1]} : vector<32x48xf32> to vector<32x24xf32>
    %122 = tpu.concatenate %120, %121 in 0 : vector<32x24xf32>, vector<32x24xf32> -> vector<64x24xf32>
    %123 = vector.extract_strided_slice %122 {offsets = [0, 0], sizes = [64, 8], strides = [1, 1]} : vector<64x24xf32> to vector<64x8xf32>
    %124 = vector.extract_strided_slice %122 {offsets = [0, 8], sizes = [64, 8], strides = [1, 1]} : vector<64x24xf32> to vector<64x8xf32>
    %125 = vector.extract_strided_slice %122 {offsets = [0, 16], sizes = [64, 8], strides = [1, 1]} : vector<64x24xf32> to vector<64x8xf32>
    %cst_57 = arith.constant dense<0.000000e+00> : vector<64x64xf32>
    %126 = tpu.matmul %123, %124, %cst_57 {dimension_numbers = #tpu.dot_dimension_numbers<[1], [1], [0], [0], [0, 0, 1, 0], [], []>} : vector<64x8xf32>, vector<64x8xf32>, vector<64x64xf32> -> vector<64x64xf32>
    %127 = arith.addf %126, %3 : vector<64x64xf32>
    %cst_58 = arith.constant dense<0xFF800000> : vector<64xf32>
    %128 = vector.multi_reduction <maximumf>, %127, %cst_58 [1] : vector<64x64xf32> to vector<64xf32>
    %129 = vector.shape_cast %128 : vector<64xf32> to vector<64x1xf32>
    %130 = vector.broadcast %129 : vector<64x1xf32> to vector<64x64xf32>
    %131 = arith.subf %127, %130 : vector<64x64xf32>
    %132 = math.exp %131 : vector<64x64xf32>
    %cst_59 = arith.constant dense<0.000000e+00> : vector<64xf32>
    %133 = vector.multi_reduction <add>, %132, %cst_59 [1] : vector<64x64xf32> to vector<64xf32>
    %134 = vector.shape_cast %133 : vector<64xf32> to vector<64x1xf32>
    %135 = tpu.reciprocal %134 {approx = true} : vector<64x1xf32> -> vector<64x1xf32>
    %136 = vector.broadcast %135 : vector<64x1xf32> to vector<64x64xf32>
    %137 = arith.mulf %132, %136 : vector<64x64xf32>
    %cst_60 = arith.constant dense<0.000000e+00> : vector<64x8xf32>
    %138 = tpu.matmul %137, %125, %cst_60 {dimension_numbers = #tpu.dot_dimension_numbers<[1], [0], [0], [1], [0, 0, 1, 1], [], []>} : vector<64x64xf32>, vector<64x8xf32>, vector<64x8xf32> -> vector<64x8xf32>
    %c1_61 = arith.constant 1 : index
    %c16_62 = arith.constant 16 : index
    %c0_63 = arith.constant 0 : index
    %139 = vector.load %arg2[%c1_61, %c16_62, %c0_63] : memref<2x80x48xf32, #tpu.memory_space<vmem>>, vector<1x16x16xf32>
    %140 = vector.shape_cast %139 : vector<1x16x16xf32> to vector<16x16xf32>
    %c1_64 = arith.constant 1 : index
    %c1_65 = arith.constant 1 : index
    %c0_66 = arith.constant 0 : index
    %141 = vector.load %arg3[%c1_64, %c1_65, %c0_66] : memref<2x8x48xf32, #tpu.memory_space<vmem>>, vector<1x1x16xf32>
    %142 = vector.shape_cast %141 : vector<1x1x16xf32> to vector<1x16xf32>
    %143 = vector.extract_strided_slice %138 {offsets = [0, 0], sizes = [32, 8], strides = [1, 1]} : vector<64x8xf32> to vector<32x8xf32>
    %144 = vector.extract_strided_slice %140 {offsets = [0, 0], sizes = [8, 16], strides = [1, 1]} : vector<16x16xf32> to vector<8x16xf32>
    %cst_67 = arith.constant dense<0.000000e+00> : vector<32x16xf32>
    %145 = tpu.matmul %143, %144, %cst_67 {dimension_numbers = #tpu.dot_dimension_numbers<[1], [0], [0], [1], [0, 0, 1, 1], [], []>} : vector<32x8xf32>, vector<8x16xf32>, vector<32x16xf32> -> vector<32x16xf32>
    %146 = vector.broadcast %142 : vector<1x16xf32> to vector<32x16xf32>
    %147 = arith.addf %146, %145 : vector<32x16xf32>
    %148 = vector.extract_strided_slice %138 {offsets = [32, 0], sizes = [32, 8], strides = [1, 1]} : vector<64x8xf32> to vector<32x8xf32>
    %149 = vector.extract_strided_slice %140 {offsets = [8, 0], sizes = [8, 16], strides = [1, 1]} : vector<16x16xf32> to vector<8x16xf32>
    %cst_68 = arith.constant dense<0.000000e+00> : vector<32x16xf32>
    %150 = tpu.matmul %148, %149, %cst_68 {dimension_numbers = #tpu.dot_dimension_numbers<[1], [0], [0], [1], [0, 0, 1, 1], [], []>} : vector<32x8xf32>, vector<8x16xf32>, vector<32x16xf32> -> vector<32x16xf32>
    %151 = arith.addf %147, %150 : vector<32x16xf32>
    %152 = arith.addf %112, %151 : vector<32x16xf32>
    %c1_69 = arith.constant 1 : index
    %c4_70 = arith.constant 4 : index
    %c0_71 = arith.constant 0 : index
    %153 = vector.load %arg3[%c1_69, %c4_70, %c0_71] : memref<2x8x48xf32, #tpu.memory_space<vmem>>, vector<1x1x16xf32>
    %154 = vector.shape_cast %153 : vector<1x1x16xf32> to vector<1x16xf32>
    %c1_72 = arith.constant 1 : index
    %c5_73 = arith.constant 5 : index
    %c0_74 = arith.constant 0 : index
    %155 = vector.load %arg3[%c1_72, %c5_73, %c0_74] : memref<2x8x48xf32, #tpu.memory_space<vmem>>, vector<1x1x16xf32>
    %156 = vector.shape_cast %155 : vector<1x1x16xf32> to vector<1x16xf32>
    %cst_75 = arith.constant dense<0.000000e+00> : vector<32xf32>
    %157 = vector.multi_reduction <add>, %152, %cst_75 [1] : vector<32x16xf32> to vector<32xf32>
    %158 = vector.shape_cast %157 : vector<32xf32> to vector<32x1xf32>
    %cst_76 = arith.constant 1.600000e+01 : f32
    %159 = vector.broadcast %cst_76 : f32 to vector<32x1xf32>
    %160 = arith.divf %158, %159 : vector<32x1xf32>
    %161 = vector.broadcast %160 : vector<32x1xf32> to vector<32x16xf32>
    %162 = arith.subf %152, %161 : vector<32x16xf32>
    %163 = arith.mulf %162, %162 : vector<32x16xf32>
    %cst_77 = arith.constant dense<0.000000e+00> : vector<32xf32>
    %164 = vector.multi_reduction <add>, %163, %cst_77 [1] : vector<32x16xf32> to vector<32xf32>
    %165 = vector.shape_cast %164 : vector<32xf32> to vector<32x1xf32>
    %cst_78 = arith.constant 1.600000e+01 : f32
    %166 = vector.broadcast %cst_78 : f32 to vector<32x1xf32>
    %167 = arith.divf %165, %166 : vector<32x1xf32>
    %168 = vector.broadcast %160 : vector<32x1xf32> to vector<32x16xf32>
    %169 = arith.subf %152, %168 : vector<32x16xf32>
    %cst_79 = arith.constant 9.99999974E-6 : f32
    %170 = vector.broadcast %cst_79 : f32 to vector<32x1xf32>
    %171 = arith.addf %167, %170 : vector<32x1xf32>
    %172 = math.rsqrt %171 : vector<32x1xf32>
    %173 = vector.broadcast %172 : vector<32x1xf32> to vector<32x16xf32>
    %174 = arith.mulf %169, %173 : vector<32x16xf32>
    %175 = vector.broadcast %154 : vector<1x16xf32> to vector<32x16xf32>
    %176 = arith.mulf %174, %175 : vector<32x16xf32>
    %177 = vector.broadcast %156 : vector<1x16xf32> to vector<32x16xf32>
    %178 = arith.addf %176, %177 : vector<32x16xf32>
    %c1_80 = arith.constant 1 : index
    %c32_81 = arith.constant 32 : index
    %c0_82 = arith.constant 0 : index
    %179 = vector.load %arg2[%c1_80, %c32_81, %c0_82] : memref<2x80x48xf32, #tpu.memory_space<vmem>>, vector<1x16x32xf32>
    %180 = vector.shape_cast %179 : vector<1x16x32xf32> to vector<16x32xf32>
    %c1_83 = arith.constant 1 : index
    %c2_84 = arith.constant 2 : index
    %c0_85 = arith.constant 0 : index
    %181 = vector.load %arg3[%c1_83, %c2_84, %c0_85] : memref<2x8x48xf32, #tpu.memory_space<vmem>>, vector<1x1x32xf32>
    %182 = vector.shape_cast %181 : vector<1x1x32xf32> to vector<1x32xf32>
    %cst_86 = arith.constant dense<0.000000e+00> : vector<32x32xf32>
    %183 = tpu.matmul %178, %180, %cst_86 {dimension_numbers = #tpu.dot_dimension_numbers<[1], [0], [0], [1], [0, 0, 1, 1], [], []>} : vector<32x16xf32>, vector<16x32xf32>, vector<32x32xf32> -> vector<32x32xf32>
    %184 = vector.broadcast %182 : vector<1x32xf32> to vector<32x32xf32>
    %185 = arith.addf %183, %184 : vector<32x32xf32>
    %cst_87 = arith.constant 0.000000e+00 : f32
    %186 = vector.broadcast %cst_87 : f32 to vector<32x32xf32>
    %187 = arith.maximumf %185, %186 : vector<32x32xf32>
    %c1_88 = arith.constant 1 : index
    %c48_89 = arith.constant 48 : index
    %c0_90 = arith.constant 0 : index
    %188 = vector.load %arg2[%c1_88, %c48_89, %c0_90] : memref<2x80x48xf32, #tpu.memory_space<vmem>>, vector<1x32x16xf32>
    %189 = vector.shape_cast %188 : vector<1x32x16xf32> to vector<32x16xf32>
    %c1_91 = arith.constant 1 : index
    %c3_92 = arith.constant 3 : index
    %c0_93 = arith.constant 0 : index
    %190 = vector.load %arg3[%c1_91, %c3_92, %c0_93] : memref<2x8x48xf32, #tpu.memory_space<vmem>>, vector<1x1x16xf32>
    %191 = vector.shape_cast %190 : vector<1x1x16xf32> to vector<1x16xf32>
    %cst_94 = arith.constant dense<0.000000e+00> : vector<32x16xf32>
    %192 = tpu.matmul %187, %189, %cst_94 {dimension_numbers = #tpu.dot_dimension_numbers<[1], [0], [0], [1], [0, 0, 1, 1], [], []>} : vector<32x32xf32>, vector<32x16xf32>, vector<32x16xf32> -> vector<32x16xf32>
    %193 = vector.broadcast %191 : vector<1x16xf32> to vector<32x16xf32>
    %194 = arith.addf %192, %193 : vector<32x16xf32>
    %195 = arith.addf %178, %194 : vector<32x16xf32>
    %c1_95 = arith.constant 1 : index
    %c6_96 = arith.constant 6 : index
    %c0_97 = arith.constant 0 : index
    %196 = vector.load %arg3[%c1_95, %c6_96, %c0_97] : memref<2x8x48xf32, #tpu.memory_space<vmem>>, vector<1x1x16xf32>
    %197 = vector.shape_cast %196 : vector<1x1x16xf32> to vector<1x16xf32>
    %c1_98 = arith.constant 1 : index
    %c7_99 = arith.constant 7 : index
    %c0_100 = arith.constant 0 : index
    %198 = vector.load %arg3[%c1_98, %c7_99, %c0_100] : memref<2x8x48xf32, #tpu.memory_space<vmem>>, vector<1x1x16xf32>
    %199 = vector.shape_cast %198 : vector<1x1x16xf32> to vector<1x16xf32>
    %cst_101 = arith.constant dense<0.000000e+00> : vector<32xf32>
    %200 = vector.multi_reduction <add>, %195, %cst_101 [1] : vector<32x16xf32> to vector<32xf32>
    %201 = vector.shape_cast %200 : vector<32xf32> to vector<32x1xf32>
    %cst_102 = arith.constant 1.600000e+01 : f32
    %202 = vector.broadcast %cst_102 : f32 to vector<32x1xf32>
    %203 = arith.divf %201, %202 : vector<32x1xf32>
    %204 = vector.broadcast %203 : vector<32x1xf32> to vector<32x16xf32>
    %205 = arith.subf %195, %204 : vector<32x16xf32>
    %206 = arith.mulf %205, %205 : vector<32x16xf32>
    %cst_103 = arith.constant dense<0.000000e+00> : vector<32xf32>
    %207 = vector.multi_reduction <add>, %206, %cst_103 [1] : vector<32x16xf32> to vector<32xf32>
    %208 = vector.shape_cast %207 : vector<32xf32> to vector<32x1xf32>
    %cst_104 = arith.constant 1.600000e+01 : f32
    %209 = vector.broadcast %cst_104 : f32 to vector<32x1xf32>
    %210 = arith.divf %208, %209 : vector<32x1xf32>
    %211 = vector.broadcast %203 : vector<32x1xf32> to vector<32x16xf32>
    %212 = arith.subf %195, %211 : vector<32x16xf32>
    %cst_105 = arith.constant 9.99999974E-6 : f32
    %213 = vector.broadcast %cst_105 : f32 to vector<32x1xf32>
    %214 = arith.addf %210, %213 : vector<32x1xf32>
    %215 = math.rsqrt %214 : vector<32x1xf32>
    %216 = vector.broadcast %215 : vector<32x1xf32> to vector<32x16xf32>
    %217 = arith.mulf %212, %216 : vector<32x16xf32>
    %218 = vector.broadcast %197 : vector<1x16xf32> to vector<32x16xf32>
    %219 = arith.mulf %217, %218 : vector<32x16xf32>
    %220 = vector.broadcast %199 : vector<1x16xf32> to vector<32x16xf32>
    %221 = arith.addf %219, %220 : vector<32x16xf32>
    %c128 = arith.constant 128 : index
    %c0_106 = arith.constant 0 : index
    %222 = vector.load %arg1[%c128, %c0_106] : memref<224x64xf32, #tpu.memory_space<vmem>>, vector<16x64xf32>
    %c96 = arith.constant 96 : index
    %c0_107 = arith.constant 0 : index
    %223 = vector.load %arg1[%c96, %c0_107] : memref<224x64xf32, #tpu.memory_space<vmem>>, vector<32x64xf32>
    %c144 = arith.constant 144 : index
    %c0_108 = arith.constant 0 : index
    %224 = vector.load %arg1[%c144, %c0_108] : memref<224x64xf32, #tpu.memory_space<vmem>>, vector<64x8xf32>
    %c208 = arith.constant 208 : index
    %c0_109 = arith.constant 0 : index
    %225 = vector.load %arg1[%c208, %c0_109] : memref<224x64xf32, #tpu.memory_space<vmem>>, vector<4x32xf32>
    %c216 = arith.constant 216 : index
    %c0_110 = arith.constant 0 : index
    %226 = vector.load %arg1[%c216, %c0_110] : memref<224x64xf32, #tpu.memory_space<vmem>>, vector<1x8xf32>
    %cst_111 = arith.constant dense<0.000000e+00> : vector<32x64xf32>
    %227 = tpu.matmul %221, %222, %cst_111 {dimension_numbers = #tpu.dot_dimension_numbers<[1], [0], [0], [1], [0, 0, 1, 1], [], []>, precision = #tpu.contract_precision<fp32>} : vector<32x16xf32>, vector<16x64xf32>, vector<32x64xf32> -> vector<32x64xf32>
    %228 = arith.mulf %227, %223 : vector<32x64xf32>
    %cst_112 = arith.constant dense<0.000000e+00> : vector<32x8xf32>
    %229 = tpu.matmul %228, %224, %cst_112 {dimension_numbers = #tpu.dot_dimension_numbers<[1], [0], [0], [1], [0, 0, 1, 1], [], []>, precision = #tpu.contract_precision<fp32>} : vector<32x64xf32>, vector<64x8xf32>, vector<32x8xf32> -> vector<32x8xf32>
    %cst_113 = arith.constant dense<0.000000e+00> : vector<4x8xf32>
    %230 = tpu.matmul %225, %229, %cst_113 {dimension_numbers = #tpu.dot_dimension_numbers<[1], [0], [0], [1], [0, 0, 1, 1], [], []>, precision = #tpu.contract_precision<fp32>} : vector<4x32xf32>, vector<32x8xf32>, vector<4x8xf32> -> vector<4x8xf32>
    %231 = vector.broadcast %226 : vector<1x8xf32> to vector<4x8xf32>
    %232 = arith.addf %230, %231 : vector<4x8xf32>
    %c0_114 = arith.constant 0 : index
    %c0_115 = arith.constant 0 : index
    %233 = vector.load %arg4[%c0_114, %c0_115] : memref<4x8xf32, #tpu.memory_space<vmem>>, vector<4x8xf32>
    tpu.vector_store %arg4[%c0_114, %c0_115], %232 {strides = array<i32>} : memref<4x8xf32, #tpu.memory_space<vmem>>, vector<4x8xf32>,
    return
  }
}

</mosaic_0001>

<bundles_post_ra>
// kernel: transformer_forward.1
= control target key start
LH: loop header
LB: loop body
LE: loop exit
PB: predicated region body
PF: predicated region fallthrough
CT: control target
= control target key end

     0   :  { %vm45_vm0 = vcmask 130048   ;;  %s6171_s0 = inlined_call_operand.vmem [shape: f32[32,16], index: 0, kind: input, shape index: {}]   ;;  %s6172_s1 = inlined_call_operand.vmem [shape: f32[224,64], index: 1, kind: input, shape index: {}]   ;;  %s6173_s2 = inlined_call_operand.vmem [shape: f32[2,80,48], index: 2, kind: input, shape index: {}]   ;;  %s6174_s3 = inlined_call_operand.vmem [shape: f32[2,8,48], index: 3, kind: input, shape index: {}]   ;;  %s6175_s4 = inlined_call_operand.hbm [shape: f32[4,8], index: 4, kind: output, shape index: {}]  }
   0x1   :  { %v38_v0 = vld [vmem:[%s6173_s2] sm:$0xff]  ;;  %v39_v1 = vld [vmem:[%s6173_s2 + $0x8] sm:$0xff]  ;;  %v20_v8 = vld [vmem:[%s6171_s0 + $0x10] sm:$0xff] }
   0x2   :  { %v18_v2 = vld [vmem:[%s6171_s0] sm:$0xff]  ;;  %v4868_v3 = vpack.c.bf16 %v39_v1, %v38_v0  ;;  %v19_v5 = vld [vmem:[%s6171_s0 + $0x8] sm:$0xff]  ;;  %v24_v9 = vld [vmem:[%s6172_s1 + $0x10] sm:$0xff] }
   0x3   :  { %v22_v4 = vld [vmem:[%s6172_s1] sm:$0xff]  ;;  %v23_v6 = vld [vmem:[%s6172_s1 + $0x8] sm:$0xff] }
   0x4   :  { %v5468_v7 = vadd.f32 %v22_v4, %v18_v2  ;;  %4869 = vmatprep.subr.bf16.mxu0 %v4868_v3  ;;  %v5476_v10 = vadd.f32 %v23_v6, %v19_v5 }
   0x5   :  { %9 = vsyncpa [#allocation3], 0  ;;  %4871 = vmatpush3.bf16.msra.mxu0 %v4868_v3  ;;  %v5480_v11 = vadd.f32 %v24_v9, %v20_v8  ;;  %v21_v12 = vld [vmem:[%s6171_s0 + $0x18] sm:$0xff]  ;;  %v4013_v15 = vld [vmem:[%s6174_s3] ss:$0 sm:$0xff]  ;;  %vm171_vm1 = vcmask 64512  }
   0x6   :  { %4402 = vmatprep.mubr.msk.f32.mxu0 %vm45_vm0, %v5468_v7  ;;  %v25_v13 = vld [vmem:[%s6172_s1 + $0x18] sm:$0xff]  ;;  %s5418_s0 = smov 104   ;;  %s5419_s11 = smov 120   ;;  %vm5520_vm2 = vmpackc.low %vm171_vm1, %vm171_vm1  ;;  %v5552_v49 = vld [vmem:[%s6172_s1 + $0x28] sm:$0xff]  ;;  %vm309_vm3 = vcmask 523264   ;;  %vm952_vm4 = vcmask 261120  }
   0x7   :  { %v5490_v14 = vadd.f32 %v25_v13, %v21_v12  ;;  %v5557_v50 = vld [vmem:[%s6172_s1 + $0x20] sm:$0xff]  ;;  %v5565_v56 = vld [vmem:[%s6172_s1 + $0x30] sm:$0xff]  ;;  %v5571_v59 = vld [vmem:[%s6172_s1 + $0x38] sm:$0xff]  ;;  %s5420_s28 = smov 112   ;;  %vm5422_vm5 = vmmov 0   ;;  %s5424_s18 = smov [#allocation2]  }
   0x8   :  { %4403 = vmatmul.mubr.msk.f32.vlgmr.msra.gmra.mrb[0].mxu0 %vm45_vm0, %v5476_v10  ;;  %v5577_v62 = vld [vmem:[%s6172_s1 + $0x40] sm:$0xff]  ;;  %v5584_v2 = vld [vmem:[%s6172_s1 + $0x48] sm:$0xff]  ;;  %v5590_v5 = vld [vmem:[%s6172_s1 + $0x50] sm:$0xff]  ;;  %s4005_s19 = sshll.u32 %s5424_s18, 4  ;;  %vm3997_vm6 = vcmask 60416   ;;  %s4006_s19 = int_to_ptr.vmem [resolvable:$true] %s4005_s19 }
   0x9   :  { %4405 = vmatprep.mubr.msk.f32.mxu0 %vm45_vm0, %v5480_v11  ;;  %v5598_v13 = vld [vmem:[%s6172_s1 + $0x58] sm:$0xff]  ;;  %s5394_s20 = scalar_lea.vmem %s4006_s19, 64  ;;  %p5399_p1 = scmp.lt.s32.totalorder %s4006_s19, %s4006_s19 }
   0xa   :  { %p5395_p0 = scmp.ne.s32.totalorder %s4006_s19, %s5394_s20  ;;  %p5400_p2 = scmp.lt.s32.totalorder %s5394_s20, %s5394_s20 }
   0xc   :  { %4406 = vmatmul.mubr.msk.f32.gmra.mrb[2].mxu0 %vm45_vm0, %v5490_v14  ;;  %p5401_p3 = por %p5400_p2, %p5399_p1 }
   0xe   :  { %p5402_p4 = pnand %p5401_p3, %p5395_p0 }
  0xdb   :  { %v4404_v16 = vpop.f32.mrb[0].mxu0 }
  0xdc   :  { %v124_v17 = vpop.f32.mrb[1].mxu0  ;;  %v130_v21 = vadd.f32 %v4404_v16, %v4013_v15 }
  0xdd   :  { %v125_v18 = vadd.f32 %v4013_v15, %v124_v17 }
  0xdf   :  { %v4407_v19 = vpop.f32.mrb[2].mxu0  ;;  %147 = vrot.lane.b32.xlu0 %v125_v18, %s5418_s0  ;;  %4424 = vmatprep.mubr.msk.f32.mxu1 %vm171_vm1, %v125_v18  ;;  %v5503_v24 = vpack.i.bf16 %v130_v21, %v125_v18 }
  0xe0   :  { %v134_v20 = vpop.f32.mrb[3].mxu0  ;;  %v140_v23 = vadd.f32 %v4407_v19, %v4013_v15 }
  0xe1   :  { %v135_v22 = vadd.f32 %v4013_v15, %v134_v20 }
  0xe3   :  { %151 = vrot.lane.b32.xlu1 %v135_v22, %s5418_s0  ;;  %149 = vrot.lane.b32.xlu0 %v130_v21, %s5418_s0  ;;  %v5508_v25 = vpack.i.bf16 %v140_v23, %v135_v22 }
  0xe7   :  { %153 = vrot.lane.b32.xlu1 %v140_v23, %s5418_s0  ;;  %5219 = vrot.lane.b32.xlu0 %v5503_v24, %s5419_s11 }
  0xeb   :  { %5224 = vrot.lane.b32.xlu1 %v5508_v25, %s5419_s11 }
 0x151   :  { %v148_v26 = vpop.permute.xlu0 %147 }
 0x155   :  { %v152_v27 = vpop.permute.xlu1 %151  ;;  %v150_v28 = vpop.permute.xlu0 %149 }
 0x156   :  { %v5512_v29 = vpack.i.bf16 %v150_v28, %v148_v26 }
 0x158   :  { %5229 = vrot.lane.b32.xlu0 %v5512_v29, %s5419_s11 }
 0x159   :  { %v154_v30 = vpop.permute.xlu1 %153  ;;  %v5220_v31 = vpop.permute.xlu0 %5219 }
 0x15a   :  { %v5516_v32 = vpack.i.bf16 %v154_v30, %v152_v27  ;;  %v5222_v33 = vunpack.i.h.bf16 %v5220_v31  ;;  %v5221_v34 = vunpack.i.l.bf16 %v5220_v31 }
 0x15c   :  { %5234 = vrot.lane.b32.xlu1 %v5516_v32, %s5419_s11  ;;  %v4872_v36 = vpack.c.bf16 %v5222_v33, %v5221_v34 }
 0x15d   :  { %v5225_v37 = vpop.permute.xlu1 %5224 }
 0x15e   :  { %v5227_v38 = vunpack.i.h.bf16 %v5225_v37  ;;  %v5226_v39 = vunpack.i.l.bf16 %v5225_v37  ;;  %4874 = vmatprep.subr.msk.bf16.mxu1 %vm5520_vm2, %v4872_v36 }
 0x15f   :  { %4877 = vmatpush3.bf16.xpose.msk.msra.mxu1 %vm5520_vm2, %v4872_v36 }
 0x160   :  { %v4878_v40 = vpack.c.bf16 %v5227_v38, %v5226_v39 }
 0x162   :  { %4880 = vmatprep.subr.msk.bf16.mxu1 %vm5520_vm2, %v4878_v40 }
 0x167   :  { %4883 = vmatpush3.bf16.xpose.msk.msra.mxu1 %vm5520_vm2, %v4878_v40 }
 0x1ca   :  { %v5230_v41 = vpop.permute.xlu0 %5229 }
 0x1cb   :  { %v5232_v42 = vunpack.i.h.bf16 %v5230_v41  ;;  %v5231_v43 = vunpack.i.l.bf16 %v5230_v41 }
 0x1cd   :  { %v4884_v44 = vpack.c.bf16 %v5232_v42, %v5231_v43 }
 0x1ce   :  { %v5235_v45 = vpop.permute.xlu1 %5234 }
 0x1cf   :  { %v5237_v46 = vunpack.i.h.bf16 %v5235_v45  ;;  %v5236_v47 = vunpack.i.l.bf16 %v5235_v45  ;;  %4886 = vmatprep.subr.msk.bf16.mxu1 %vm5520_vm2, %v4884_v44 }
 0x1d0   :  { %4889 = vmatpush3.bf16.xpose.msk.msra.mxu1 %vm5520_vm2, %v4884_v44 }
 0x1d1   :  { %v4890_v48 = vpack.c.bf16 %v5237_v46, %v5236_v47 }
 0x1d3   :  { %4892 = vmatprep.subr.msk.bf16.mxu1 %vm5520_vm2, %v4890_v48 }
 0x1d8   :  { %4895 = vmatpush3.bf16.xpose.msk.msra.mxu1 %vm5520_vm2, %v4890_v48 }
 0x1df   :  { %4425 = vmatmul.mubr.msk.f32.vlgmr.msra.gmra.mrb[0].mxu1 %vm171_vm1, %v130_v21 }
 0x1e0   :  { %4427 = vmatprep.mubr.msk.f32.mxu1 %vm171_vm1, %v135_v22 }
 0x1e3   :  { %4428 = vmatmul.mubr.msk.f32.gmra.mrb[2].mxu1 %vm171_vm1, %v140_v23 }
 0x1e4   :  { %4430 = vmatprep.mubr.msk.f32.mxu1 %vm171_vm1, %v148_v26 }
 0x1e7   :  { %4431 = vmatmul.mubr.msk.f32.gmra.mrb[4].mxu1 %vm171_vm1, %v150_v28 }
 0x1e8   :  { %4433 = vmatprep.mubr.msk.f32.mxu1 %vm171_vm1, %v152_v27 }
 0x1eb   :  { %4434 = vmatmul.mubr.msk.f32.gmra.mrb[6].mxu1 %vm171_vm1, %v154_v30 }
 0x2b2   :  { %v4426_v51 = vpop.f32.mrb[0].mxu1 }
 0x2b3   :  { %v276_v52 = vadd.f32 %v4426_v51, %v5552_v49  ;;  %v270_v53 = vpop.f32.mrb[1].mxu1 }
 0x2b4   :  { %v271_v54 = vadd.f32 %v270_v53, %v5557_v50 }
 0x2b5   :  { %v313_v55 = vsel %vm309_vm3, %v276_v52, -inf }
 0x2b6   :  { %314 = vmax.xlane.f32.xlu1 %v313_v55  ;;  %v4429_v57 = vpop.f32.mrb[2].mxu1  ;;  %v310_v58 = vsel %vm309_vm3, %v271_v54, -inf }
 0x2b7   :  { %v280_v60 = vpop.f32.mrb[3].mxu1  ;;  %311 = vmax.xlane.f32.xlu0 %v310_v58  ;;  %v286_v63 = vadd.f32 %v4429_v57, %v5571_v59 }
 0x2b8   :  { %v281_v61 = vadd.f32 %v280_v60, %v5565_v56 }
 0x2b9   :  { %v319_v12 = vsel %vm309_vm3, %v286_v63, -inf }
 0x2ba   :  { %v4432_v0 = vpop.f32.mrb[4].mxu1  ;;  %v316_v1 = vsel %vm309_vm3, %v281_v61, -inf }
 0x2bb   :  { %v290_v3 = vpop.f32.mrb[5].mxu1  ;;  %317 = vmax.xlane.f32.xlu0 %v316_v1  ;;  %v296_v6 = vadd.f32 %v4432_v0, %v5584_v2 }
 0x2bc   :  { %v291_v4 = vadd.f32 %v290_v3, %v5577_v62 }
 0x2bd   :  { %v325_v19 = vsel %vm309_vm3, %v296_v6, -inf }
 0x2be   :  { %v4435_v8 = vpop.f32.mrb[6].mxu1  ;;  %v322_v9 = vsel %vm309_vm3, %v291_v4, -inf }
 0x2bf   :  { %v300_v15 = vpop.f32.mrb[7].mxu1  ;;  %323 = vmax.xlane.f32.xlu1 %v322_v9  ;;  %320 = vmax.xlane.f32.xlu0 %v319_v12  ;;  %v306_v17 = vadd.f32 %v4435_v8, %v5598_v13 }
 0x2c0   :  { %v301_v16 = vadd.f32 %v300_v15, %v5590_v5 }
 0x2c1   :  { %v331_v20 = vsel %vm309_vm3, %v306_v17, -inf }
 0x2c2   :  { %v328_v18 = vsel %vm309_vm3, %v301_v16, -inf }
 0x2c3   :  { %329 = vmax.xlane.f32.xlu1 %v328_v18  ;;  %326 = vmax.xlane.f32.xlu0 %v325_v19 }
 0x2c7   :  { %332 = vmax.xlane.f32.xlu0 %v331_v20 }
 0x2d4   :  { %5239 = vrot.lane.b32.xlu1 %v5503_v24, %s5420_s28 }
 0x2dd   :  { %5244 = vrot.lane.b32.xlu0 %v5508_v25, %s5420_s28 }
 0x343   :  { %v315_v21 = vpop.xlane.xlu1 %314 }
 0x344   :  { %v335_v22 = vsub.f32 %v276_v52, %v315_v21  ;;  %v312_v23 = vpop.xlane.xlu0 %311 }
 0x345   :  { %v334_v26 = vsub.f32 %v271_v54, %v312_v23 }
 0x346   :  { %v344_v27 = vmul.f32 1.442695, %v335_v22 }
 0x347   :  { %v342_v28 = vmul.f32 1.442695, %v334_v26 }
 0x348   :  { %5298 = vpow2.f32 %v344_v27  ;;  %v318_v30 = vpop.xlane.xlu0 %317 }
 0x349   :  { %5300 = vpow2.f32 %v342_v28  ;;  %v336_v31 = vsub.f32 %v281_v61, %v318_v30 }
 0x34b   :  { %v346_v33 = vmul.f32 1.442695, %v336_v31 }
 0x34c   :  { %v324_v34 = vpop.xlane.xlu1 %323  ;;  %v321_v36 = vpop.xlane.xlu0 %320 }
 0x34d   :  { %5302 = vpow2.f32 %v346_v33  ;;  %v338_v37 = vsub.f32 %v291_v4, %v324_v34  ;;  %v337_v38 = vsub.f32 %v286_v63, %v321_v36 }
 0x34f   :  { %v350_v24 = vmul.f32 1.442695, %v338_v37  ;;  %v348_v39 = vmul.f32 1.442695, %v337_v38 }
 0x350   :  { %v330_v40 = vpop.xlane.xlu1 %329  ;;  %v327_v25 = vpop.xlane.xlu0 %326 }
 0x351   :  { %5304 = vpow2.f32 %v350_v24  ;;  %v340_v41 = vsub.f32 %v301_v16, %v330_v40  ;;  %v339_v42 = vsub.f32 %v296_v6, %v327_v25  ;;  %v551_v25 = vld [vmem:[%s6173_s2 + $0x10] sm:$0xff] }
 0x352   :  { %v5609_v43 = vpop.eup %5298  ;;  %5306 = vpow2.f32 %v348_v39 }
 0x353   :  { %v5301_v44 = vpop.eup %5300  ;;  %v354_v45 = vmul.f32 1.442695, %v340_v41  ;;  %v352_v46 = vmul.f32 1.442695, %v339_v42  ;;  %v361_v47 = vsel %vm309_vm3, %v5609_v43, 0.0 }
 0x354   :  { %v5240_v48 = vpop.permute.xlu1 %5239  ;;  %362 = vadd.xlane.f32.xlu0 %v361_v47  ;;  %v333_v51 = vpop.xlane.xlu0 %332  ;;  %v358_v52 = vsel %vm309_vm3, %v5301_v44, 0.0 }
 0x355   :  { %5308 = vpow2.f32 %v354_v45  ;;  %v5242_v53 = vunpack.i.h.bf16 %v5240_v48  ;;  %v5241_v54 = vunpack.i.l.bf16 %v5240_v48  ;;  %v341_v55 = vsub.f32 %v306_v17, %v333_v51  ;;  %359 = vadd.xlane.f32.xlu1 %v358_v52 }
 0x356   :  { %5310 = vpow2.f32 %v352_v46 }
 0x357   :  { %v5614_v57 = vpop.eup %5302  ;;  %v4896_v58 = vpack.c.bf16 %v5242_v53, %v5241_v54  ;;  %v356_v60 = vmul.f32 1.442695, %v341_v55 }
 0x358   :  { %v5245_v61 = vpop.permute.xlu0 %5244  ;;  %v364_v63 = vsel %vm309_vm3, %v5614_v57, 0.0 }
 0x359   :  { %5312 = vpow2.f32 %v356_v60  ;;  %v5247_v0 = vunpack.i.h.bf16 %v5245_v61  ;;  %v5246_v1 = vunpack.i.l.bf16 %v5245_v61  ;;  %4897 = vmatprep.subr.bf16.mxu0 %v4896_v58  ;;  %365 = vadd.xlane.f32.xlu1 %v364_v63 }
 0x35a   :  { %4899 = vmatpush3.bf16.msra.mxu0 %v4896_v58 }
 0x35b   :  { %v5618_v3 = vpop.eup %5304  ;;  %v4900_v4 = vpack.c.bf16 %v5247_v0, %v5246_v1 }
 0x35c   :  { %v5307_v6 = vpop.eup %5306  ;;  %v370_v8 = vsel %vm309_vm3, %v5618_v3, 0.0 }
 0x35d   :  { %371 = vadd.xlane.f32.xlu1 %v370_v8  ;;  %v367_v9 = vsel %vm309_vm3, %v5307_v6, 0.0  ;;  %4901 = vmatprep.subr.bf16.mxu0 %v4900_v4 }
 0x35e   :  { %368 = vadd.xlane.f32.xlu0 %v367_v9  ;;  %4903 = vmatpush3.bf16.msra.mxu0 %v4900_v4 }
 0x35f   :  { %v5309_v12 = vpop.eup %5308 }
 0x360   :  { %v5311_v15 = vpop.eup %5310  ;;  %v376_v16 = vsel %vm309_vm3, %v5309_v12, 0.0 }
 0x361   :  { %377 = vadd.xlane.f32.xlu1 %v376_v16  ;;  %v373_v17 = vsel %vm309_vm3, %v5311_v15, 0.0 }
 0x362   :  { %374 = vadd.xlane.f32.xlu0 %v373_v17 }
 0x363   :  { %v5313_v18 = vpop.eup %5312 }
 0x364   :  { %v379_v19 = vsel %vm309_vm3, %v5313_v18, 0.0 }
 0x366   :  { %380 = vadd.xlane.f32.xlu0 %v379_v19 }
 0x372   :  { %5249 = vrot.lane.b32.xlu1 %v5512_v29, %s5420_s28 }
 0x37c   :  { %5254 = vrot.lane.b32.xlu0 %v5516_v32, %s5420_s28 }
 0x3e1   :  { %v363_v22 = vpop.xlane.xlu0 %362 }
 0x3e2   :  { %v360_v20 = vpop.xlane.xlu1 %359 }
 0x3e3   :  { %5314 = vrcp.f32 %v360_v20 }
 0x3e4   :  { %5316 = vrcp.f32 %v363_v22 }
 0x3e6   :  { %v366_v21 = vpop.xlane.xlu1 %365 }
 0x3e7   :  { %5318 = vrcp.f32 %v366_v21 }
 0x3ea   :  { %v372_v23 = vpop.xlane.xlu1 %371 }
 0x3eb   :  { %v369_v26 = vpop.xlane.xlu0 %368 }
 0x3ec   :  { %5320 = vrcp.f32 %v369_v26 }
 0x3ed   :  { %v5315_v27 = vpop.eup %5314  ;;  %5322 = vrcp.f32 %v372_v23 }
 0x3ee   :  { %v378_v28 = vpop.xlane.xlu1 %377  ;;  %v390_v30 = vmul.f32 %v5315_v27, %v5301_v44  ;;  %v5317_v40 = vpop.eup %5316 }
 0x3ef   :  { %v375_v31 = vpop.xlane.xlu0 %374  ;;  %v391_v42 = vmul.f32 %v5317_v40, %v5609_v43 }
 0x3f0   :  { %4452 = vmatprep.mubr.msk.f32.mxu0 %vm309_vm3, %v390_v30  ;;  %5324 = vrcp.f32 %v375_v31 }
 0x3f1   :  { %5326 = vrcp.f32 %v378_v28  ;;  %v5319_v41 = vpop.eup %5318 }
 0x3f2   :  { %v5250_v33 = vpop.permute.xlu1 %5249  ;;  %v392_v45 = vmul.f32 %v5319_v41, %v5614_v57  ;;  %v552_v57 = vld [vmem:[%s6173_s2 + $0x18] sm:$0xff] }
 0x3f3   :  { %v5252_v34 = vunpack.i.h.bf16 %v5250_v33  ;;  %v5251_v29 = vunpack.i.l.bf16 %v5250_v33  ;;  %v381_v36 = vpop.xlane.xlu0 %380 }
 0x3f4   :  { %5328 = vrcp.f32 %v381_v36 }
 0x3f5   :  { %v4904_v32 = vpack.c.bf16 %v5252_v34, %v5251_v29 }
 0x3f6   :  { %v5321_v44 = vpop.eup %5320 }
 0x3f7   :  { %v5255_v37 = vpop.permute.xlu0 %5254  ;;  %4905 = vmatprep.subr.bf16.mxu0 %v4904_v32  ;;  %v5323_v46 = vpop.eup %5322  ;;  %v393_v47 = vmul.f32 %v5321_v44, %v5307_v6  ;;  %v4046_v6 = vld [vmem:[%s6174_s3 + $0x1] ss:$0 sm:$0xff] }
 0x3f8   :  { %v5257_v38 = vunpack.i.h.bf16 %v5255_v37  ;;  %v5256_v24 = vunpack.i.l.bf16 %v5255_v37  ;;  %4907 = vmatpush3.bf16.msra.mxu0 %v4904_v32  ;;  %v394_v51 = vmul.f32 %v5323_v46, %v5618_v3  ;;  %v835_v46 = vld [vmem:[%s6173_s2 + $0x20] sm:$0xff] }
 0x3fa   :  { %v4908_v39 = vpack.c.bf16 %v5257_v38, %v5256_v24  ;;  %v5325_v48 = vpop.eup %5324 }
 0x3fb   :  { %v5327_v52 = vpop.eup %5326  ;;  %v395_v43 = vmul.f32 %v5325_v48, %v5311_v15 }
 0x3fc   :  { %4909 = vmatprep.subr.bf16.mxu0 %v4908_v39  ;;  %v396_v54 = vmul.f32 %v5327_v52, %v5309_v12  ;;  %v944_v52 = vld [vmem:[%s6173_s2 + $0x38] sm:$0xff] }
 0x3fd   :  { %4911 = vmatpush3.bf16.msra.mxu0 %v4908_v39 }
 0x3fe   :  { %4464 = vmatprep.subr.mxu0 %v551_v25  ;;  %v5329_v53 = vpop.eup %5328 }
 0x3ff   :  { %v397_v55 = vmul.f32 %v5329_v53, %v5313_v18 }
 0x400   :  { %4453 = vmatmul.mubr.msk.f32.vlgmr.msra.gmra.mrb[4].mxu0 %vm309_vm3, %v391_v42 }
 0x401   :  { %4455 = vmatprep.mubr.msk.f32.mxu0 %vm309_vm3, %v392_v45  ;;  %4465 = vmatpush3.msra.mxu0 %v551_v25 }
 0x402   :  { %4472 = vmatprep.subr.mxu0 %v552_v57 }
 0x404   :  { %4456 = vmatmul.mubr.msk.f32.gmra.mrb[6].mxu0 %vm309_vm3, %v393_v47  ;;  %v836_v47 = vld [vmem:[%s6173_s2 + $0x28] sm:$0xff] }
 0x405   :  { %4458 = vmatprep.mubr.msk.f32.mxu0 %vm309_vm3, %v394_v51  ;;  %v4912_v48 = vpack.c.bf16 %v836_v47, %v835_v46  ;;  %v943_v51 = vld [vmem:[%s6173_s2 + $0x30] sm:$0xff] }
 0x407   :  { %4913 = vmatprep.subr.bf16.mxu1 %v4912_v48 }
 0x408   :  { %4459 = vmatmul.mubr.msk.f32.gmra.mrb[8].mxu0 %vm309_vm3, %v395_v43  ;;  %4915 = vmatpush3.bf16.msra.mxu1 %v4912_v48  ;;  %v4916_v43 = vpack.c.bf16 %v944_v52, %v943_v51 }
 0x409   :  { %4461 = vmatprep.mubr.msk.f32.mxu0 %vm309_vm3, %v396_v54 }
 0x40c   :  { %4462 = vmatmul.mubr.msk.f32.gmra.mrb[10].mxu0 %vm309_vm3, %v397_v55 }
 0x4d3   :  { %v4454_v58 = vpop.f32.mrb[4].mxu0 }
 0x4d4   :  { %v512_v60 = vpop.f32.mrb[5].mxu0 }
 0x4d5   :  { %4466 = vmatprep.mubr.msk.f32.mxu0 %vm171_vm1, %v512_v60 }
 0x4d6   :  { %4467 = vmatmul.mubr.msk.f32.vlgmr.msra.gmra.mrb[12].mxu0 %vm171_vm1, %v4454_v58 }
 0x4d7   :  { %v4457_v61 = vpop.f32.mrb[6].mxu0  ;;  %4473 = vmatpush3.msra.mxu0 %v552_v57 }
 0x4d8   :  { %v522_v63 = vpop.f32.mrb[7].mxu0  ;;  %4917 = vmatprep.subr.bf16.mxu0 %v4916_v43 }
 0x4d9   :  { %4469 = vmatprep.mubr.msk.f32.mxu0 %vm171_vm1, %v522_v63 }
 0x4da   :  { %4470 = vmatmul.mubr.msk.f32.gmra.mrb[14].mxu0 %vm171_vm1, %v4457_v61 }
 0x4db   :  { %v4460_v0 = vpop.f32.mrb[8].mxu0 }
 0x4dc   :  { %v532_v1 = vpop.f32.mrb[9].mxu0 }
 0x4dd   :  { %4474 = vmatprep.mubr.msk.f32.mxu0 %vm171_vm1, %v532_v1 }
 0x4de   :  { %4475 = vmatmul.mubr.msk.f32.vlgmr.msra.gmra.mrb[12].mxu0 %vm171_vm1, %v4460_v0 }
 0x4df   :  { %v4463_v3 = vpop.f32.mrb[10].mxu0  ;;  %4919 = vmatpush3.bf16.msra.mxu0 %v4916_v43 }
 0x4e0   :  { %v542_v4 = vpop.f32.mrb[11].mxu0 }
 0x4e1   :  { %4477 = vmatprep.mubr.msk.f32.mxu0 %vm171_vm1, %v542_v4 }
 0x4e2   :  { %4478 = vmatmul.mubr.msk.f32.gmra.mrb[14].mxu0 %vm171_vm1, %v4463_v3 }
 0x5b1   :  { %v4476_v8 = vpop.f32.mrb[12].mxu0 }
 0x5b2   :  { %v5144_v9 = vadd.f32 %v4476_v8, %v4046_v6  ;;  %v737_v12 = vpop.f32.mrb[13].mxu0  ;;  %v4051_v8 = vld [vmem:[%s6174_s3 + $0x4] ss:$0 sm:$0xff] }
 0x5b3   :  { %v5145_v15 = vadd.f32 %v4046_v6, %v737_v12 }
 0x5b4   :  { %v761_v16 = vadd.f32 %v5144_v9, %v5476_v10 }
 0x5b5   :  { %v4479_v17 = vpop.f32.mrb[14].mxu0  ;;  %v760_v18 = vadd.f32 %v5145_v15, %v5468_v7 }
 0x5b6   :  { %v5146_v19 = vadd.f32 %v4479_v17, %v4046_v6  ;;  %v747_v20 = vpop.f32.mrb[15].mxu0  ;;  %v769_v21 = vsel %vm45_vm0, %v761_v16, 0.0 }
 0x5b7   :  { %v5147_v22 = vadd.f32 %v4046_v6, %v747_v20  ;;  %770 = vadd.xlane.f32.xlu0 %v769_v21  ;;  %v766_v23 = vsel %vm45_vm0, %v760_v18, 0.0 }
 0x5b8   :  { %767 = vadd.xlane.f32.xlu1 %v766_v23  ;;  %v763_v26 = vadd.f32 %v5146_v19, %v5490_v14 }
 0x5b9   :  { %v762_v27 = vadd.f32 %v5147_v22, %v5480_v11 }
 0x5ba   :  { %v775_v28 = vsel %vm45_vm0, %v763_v26, 0.0 }
 0x5bb   :  { %776 = vadd.xlane.f32.xlu0 %v775_v28  ;;  %v772_v10 = vsel %vm45_vm0, %v762_v27, 0.0 }
 0x5bc   :  { %773 = vadd.xlane.f32.xlu1 %v772_v10 }
 0x644   :  { %v771_v7 = vpop.xlane.xlu0 %770 }
 0x645   :  { %v780_v30 = vmul.f32 0.0625, %v771_v7  ;;  %v768_v31 = vpop.xlane.xlu1 %767 }
 0x646   :  { %v779_v33 = vmul.f32 0.0625, %v768_v31  ;;  %v946_v31 = vld [vmem:[%s6173_s2 + $0x48] sm:$0xff] }
 0x647   :  { %v784_v34 = vsub.f32 %v761_v16, %v780_v30  ;;  %v4052_v16 = vld [vmem:[%s6174_s3 + $0x5] ss:$0 sm:$0xff] }
 0x648   :  { %v783_v29 = vsub.f32 %v760_v18, %v779_v33  ;;  %v777_v36 = vpop.xlane.xlu0 %776  ;;  %v945_v30 = vld [vmem:[%s6173_s2 + $0x40] sm:$0xff] }
 0x649   :  { %v782_v32 = vmul.f32 0.0625, %v777_v36  ;;  %v774_v37 = vpop.xlane.xlu1 %773  ;;  %v788_v38 = vmul.f32 %v784_v34, %v784_v34  ;;  %v4920_v33 = vpack.c.bf16 %v946_v31, %v945_v30 }
 0x64a   :  { %v781_v24 = vmul.f32 0.0625, %v774_v37  ;;  %v787_v14 = vmul.f32 %v783_v29, %v783_v29 }
 0x64b   :  { %v786_v39 = vsub.f32 %v763_v26, %v782_v32  ;;  %v794_v11 = vsel %vm45_vm0, %v788_v38, 0.0  ;;  %4921 = vmatprep.subr.bf16.mxu0 %v4920_v33 }
 0x64c   :  { %v785_v40 = vsub.f32 %v762_v27, %v781_v24  ;;  %795 = vadd.xlane.f32.xlu0 %v794_v11  ;;  %v791_v25 = vsel %vm45_vm0, %v787_v14, 0.0  ;;  %4923 = vmatpush3.bf16.msra.mxu0 %v4920_v33 }
 0x64d   :  { %792 = vadd.xlane.f32.xlu1 %v791_v25  ;;  %v790_v41 = vmul.f32 %v786_v39, %v786_v39 }
 0x64e   :  { %v789_v42 = vmul.f32 %v785_v40, %v785_v40 }
 0x64f   :  { %v800_v44 = vsel %vm45_vm0, %v790_v41, 0.0 }
 0x650   :  { %801 = vadd.xlane.f32.xlu0 %v800_v44  ;;  %v797_v45 = vsel %vm45_vm0, %v789_v42, 0.0  ;;  %v4058_v42 = vld [vmem:[%s6174_s3 + $0x3] ss:$0 sm:$0xff] }
 0x651   :  { %798 = vadd.xlane.f32.xlu1 %v797_v45 }
 0x6d9   :  { %v796_v53 = vpop.xlane.xlu0 %795 }
 0x6da   :  { %v804_v54 = vmul.f32 0.0625, %v796_v53  ;;  %v793_v55 = vpop.xlane.xlu1 %792 }
 0x6db   :  { %v803_v57 = vmul.f32 0.0625, %v793_v55 }
 0x6dc   :  { %v808_v58 = vadd.f32 1e-05, %v804_v54 }
 0x6dd   :  { %v807_v60 = vadd.f32 1e-05, %v803_v57  ;;  %v802_v61 = vpop.xlane.xlu0 %801 }
 0x6de   :  { %5330 = vrsqrt.f32 %v808_v58  ;;  %v806_v63 = vmul.f32 0.0625, %v802_v61  ;;  %v799_v0 = vpop.xlane.xlu1 %798 }
 0x6df   :  { %5332 = vrsqrt.f32 %v807_v60  ;;  %v805_v1 = vmul.f32 0.0625, %v799_v0 }
 0x6e0   :  { %v810_v3 = vadd.f32 1e-05, %v806_v63 }
 0x6e1   :  { %v809_v4 = vadd.f32 1e-05, %v805_v1 }
 0x6e2   :  { %5334 = vrsqrt.f32 %v810_v3 }
 0x6e3   :  { %5336 = vrsqrt.f32 %v809_v4 }
 0x6e8   :  { %v5331_v6 = vpop.eup %5330 }
 0x6e9   :  { %v5333_v9 = vpop.eup %5332  ;;  %v816_v12 = vmul.f32 %v5331_v6, %v784_v34  ;;  %v4053_v34 = vld [vmem:[%s6174_s3 + $0x2] ss:$0 sm:$0xff] }
 0x6ea   :  { %v815_v15 = vmul.f32 %v5333_v9, %v783_v29 }
 0x6eb   :  { %v824_v17 = vmul.f32 %v4051_v8, %v816_v12 }
 0x6ec   :  { %v5335_v18 = vpop.eup %5334  ;;  %v823_v19 = vmul.f32 %v4051_v8, %v815_v15 }
 0x6ed   :  { %v5337_v20 = vpop.eup %5336  ;;  %v818_v21 = vmul.f32 %v5335_v18, %v786_v39  ;;  %v832_v26 = vadd.f32 %v4052_v16, %v824_v17 }
 0x6ee   :  { %v831_v22 = vadd.f32 %v4052_v16, %v823_v19  ;;  %v817_v23 = vmul.f32 %v5337_v20, %v785_v40 }
 0x6ef   :  { %v826_v27 = vmul.f32 %v4051_v8, %v818_v21 }
 0x6f0   :  { %4484 = vmatprep.mubr.msk.f32.mxu1 %vm45_vm0, %v831_v22  ;;  %v825_v28 = vmul.f32 %v4051_v8, %v817_v23 }
 0x6f1   :  { %4485 = vmatmul.mubr.msk.f32.vlgmr.msra.gmra.mrb[8].mxu1 %vm45_vm0, %v832_v26  ;;  %v834_v7 = vadd.f32 %v4052_v16, %v826_v27 }
 0x6f2   :  { %v833_v10 = vadd.f32 %v4052_v16, %v825_v28 }
 0x6f4   :  { %4487 = vmatprep.mubr.msk.f32.mxu1 %vm45_vm0, %v833_v10 }
 0x6f5   :  { %4488 = vmatmul.mubr.msk.f32.gmra.mrb[10].mxu1 %vm45_vm0, %v834_v7 }
 0x7c4   :  { %v4486_v29 = vpop.f32.mrb[8].mxu1 }
 0x7c5   :  { %v926_v36 = vadd.f32 %v4486_v29, %v4053_v34  ;;  %v920_v32 = vpop.f32.mrb[9].mxu1 }
 0x7c6   :  { %v921_v37 = vadd.f32 %v4053_v34, %v920_v32 }
 0x7c7   :  { %v940_v14 = vmax.f32 %v926_v36, 0.0 }
 0x7c8   :  { %v939_v38 = vmax.f32 %v921_v37, 0.0  ;;  %v4489_v24 = vpop.f32.mrb[10].mxu1 }
 0x7c9   :  { %v936_v39 = vadd.f32 %v4489_v24, %v4053_v34  ;;  %v930_v11 = vpop.f32.mrb[11].mxu1 }
 0x7ca   :  { %v931_v40 = vadd.f32 %v4053_v34, %v930_v11  ;;  %4498 = vmatprep.mubr.msk.f32.mxu0 %vm952_vm4, %v939_v38 }
 0x7cb   :  { %4499 = vmatmul.mubr.msk.f32.vlgmr.msra.gmra.mrb[16].mxu0 %vm952_vm4, %v940_v14  ;;  %v942_v41 = vmax.f32 %v936_v39, 0.0 }
 0x7cc   :  { %v941_v25 = vmax.f32 %v931_v40, 0.0 }
 0x7ce   :  { %4501 = vmatprep.mubr.msk.f32.mxu0 %vm952_vm4, %v941_v25  ;;  %v4063_v25 = vld [vmem:[%s6174_s3 + $0x6] ss:$0 sm:$0xff] }
 0x7cf   :  { %4502 = vmatmul.mubr.msk.f32.gmra.mrb[18].mxu0 %vm952_vm4, %v942_v41 }
 0x89e   :  { %v4500_v44 = vpop.f32.mrb[16].mxu0 }
 0x89f   :  { %v1037_v45 = vadd.f32 %v4500_v44, %v4058_v42  ;;  %v1031_v46 = vpop.f32.mrb[17].mxu0 }
 0x8a0   :  { %v1032_v47 = vadd.f32 %v4058_v42, %v1031_v46 }
 0x8a1   :  { %v1051_v48 = vadd.f32 %v1037_v45, %v832_v26  ;;  %v4064_v45 = vld [vmem:[%s6174_s3 + $0x7] ss:$0 sm:$0xff] }
 0x8a2   :  { %v4503_v51 = vpop.f32.mrb[18].mxu0  ;;  %v1050_v52 = vadd.f32 %v1032_v47, %v831_v22 }
 0x8a3   :  { %v1047_v43 = vadd.f32 %v4503_v51, %v4058_v42  ;;  %v1041_v53 = vpop.f32.mrb[19].mxu0  ;;  %v1059_v54 = vsel %vm45_vm0, %v1051_v48, 0.0 }
 0x8a4   :  { %v1042_v55 = vadd.f32 %v4058_v42, %v1041_v53  ;;  %1060 = vadd.xlane.f32.xlu0 %v1059_v54  ;;  %v1056_v57 = vsel %vm45_vm0, %v1050_v52, 0.0 }
 0x8a5   :  { %1057 = vadd.xlane.f32.xlu1 %v1056_v57  ;;  %v1053_v58 = vadd.f32 %v1047_v43, %v834_v7  ;;  %v4066_v7 = vld [vmem:[%s6173_s2 + $0x58] sm:$0xff] }
 0x8a6   :  { %v1052_v60 = vadd.f32 %v1042_v55, %v833_v10  ;;  %v4065_v10 = vld [vmem:[%s6173_s2 + $0x50] sm:$0xff] }
 0x8a7   :  { %v1065_v61 = vsel %vm45_vm0, %v1053_v58, 0.0  ;;  %v4924_v30 = vpack.c.bf16 %v4066_v7, %v4065_v10 }
 0x8a8   :  { %1066 = vadd.xlane.f32.xlu0 %v1065_v61  ;;  %v1062_v63 = vsel %vm45_vm0, %v1052_v60, 0.0  ;;  %v4068_v61 = vld [vmem:[%s6174_s3 + $0x8] ss:$0 sm:$0xff] }
 0x8a9   :  { %1063 = vadd.xlane.f32.xlu1 %v1062_v63  ;;  %4925 = vmatprep.subr.bf16.mxu1 %v4924_v30 }
 0x8aa   :  { %4927 = vmatpush3.bf16.msra.mxu1 %v4924_v30 }
 0x931   :  { %v1061_v0 = vpop.xlane.xlu0 %1060 }
 0x932   :  { %v1069_v1 = vmul.f32 0.0625, %v1061_v0  ;;  %v1058_v3 = vpop.xlane.xlu1 %1057 }
 0x933   :  { %v1068_v4 = vmul.f32 0.0625, %v1058_v3 }
 0x934   :  { %v1073_v6 = vsub.f32 %v1051_v48, %v1069_v1 }
 0x935   :  { %v1072_v8 = vsub.f32 %v1050_v52, %v1068_v4  ;;  %v1067_v9 = vpop.xlane.xlu0 %1066 }
 0x936   :  { %v1071_v12 = vmul.f32 0.0625, %v1067_v9  ;;  %v1064_v15 = vpop.xlane.xlu1 %1063  ;;  %v1077_v16 = vmul.f32 %v1073_v6, %v1073_v6 }
 0x937   :  { %v1070_v17 = vmul.f32 0.0625, %v1064_v15  ;;  %v1076_v18 = vmul.f32 %v1072_v8, %v1072_v8 }
 0x938   :  { %v1075_v19 = vsub.f32 %v1053_v58, %v1071_v12  ;;  %v1083_v20 = vsel %vm45_vm0, %v1077_v16, 0.0 }
 0x939   :  { %v1074_v21 = vsub.f32 %v1052_v60, %v1070_v17  ;;  %1084 = vadd.xlane.f32.xlu0 %v1083_v20  ;;  %v1080_v22 = vsel %vm45_vm0, %v1076_v18, 0.0 }
 0x93a   :  { %1081 = vadd.xlane.f32.xlu1 %v1080_v22  ;;  %v1079_v23 = vmul.f32 %v1075_v19, %v1075_v19 }
 0x93b   :  { %v1078_v26 = vmul.f32 %v1074_v21, %v1074_v21 }
 0x93c   :  { %v1089_v27 = vsel %vm45_vm0, %v1079_v23, 0.0 }
 0x93d   :  { %1090 = vadd.xlane.f32.xlu0 %v1089_v27  ;;  %v1086_v28 = vsel %vm45_vm0, %v1078_v26, 0.0 }
 0x93e   :  { %1087 = vadd.xlane.f32.xlu1 %v1086_v28 }
 0x9c6   :  { %v1085_v31 = vpop.xlane.xlu0 %1084 }
 0x9c7   :  { %v1093_v33 = vmul.f32 0.0625, %v1085_v31  ;;  %v1082_v34 = vpop.xlane.xlu1 %1081 }
 0x9c8   :  { %v1092_v29 = vmul.f32 0.0625, %v1082_v34 }
 0x9c9   :  { %v1097_v36 = vadd.f32 1e-05, %v1093_v33 }
 0x9ca   :  { %v1096_v32 = vadd.f32 1e-05, %v1092_v29  ;;  %v1091_v37 = vpop.xlane.xlu0 %1090 }
 0x9cb   :  { %5338 = vrsqrt.f32 %v1097_v36  ;;  %v1095_v38 = vmul.f32 0.0625, %v1091_v37  ;;  %v1088_v24 = vpop.xlane.xlu1 %1087 }
 0x9cc   :  { %5340 = vrsqrt.f32 %v1096_v32  ;;  %v1094_v14 = vmul.f32 0.0625, %v1088_v24 }
 0x9cd   :  { %v1099_v39 = vadd.f32 1e-05, %v1095_v38 }
 0x9ce   :  { %v1098_v11 = vadd.f32 1e-05, %v1094_v14 }
 0x9cf   :  { %5342 = vrsqrt.f32 %v1099_v39 }
 0x9d0   :  { %5344 = vrsqrt.f32 %v1098_v11 }
 0x9d5   :  { %v5339_v40 = vpop.eup %5338 }
 0x9d6   :  { %v5341_v41 = vpop.eup %5340  ;;  %v1105_v42 = vmul.f32 %v5339_v40, %v1073_v6 }
 0x9d7   :  { %v1104_v44 = vmul.f32 %v5341_v41, %v1072_v8 }
 0x9d8   :  { %v1113_v46 = vmul.f32 %v4063_v25, %v1105_v42 }
 0x9d9   :  { %v5343_v47 = vpop.eup %5342  ;;  %v1112_v48 = vmul.f32 %v4063_v25, %v1104_v44 }
 0x9da   :  { %v5345_v51 = vpop.eup %5344  ;;  %v1107_v52 = vmul.f32 %v5343_v47, %v1075_v19  ;;  %v5730_v54 = vadd.f32 %v4064_v45, %v1113_v46 }
 0x9db   :  { %v5728_v43 = vadd.f32 %v4064_v45, %v1112_v48  ;;  %v1106_v53 = vmul.f32 %v5345_v51, %v1074_v21 }
 0x9dc   :  { %v1115_v55 = vmul.f32 %v4063_v25, %v1107_v52 }
 0x9dd   :  { %4508 = vmatprep.mubr.msk.f32.mxu1 %vm45_vm0, %v5728_v43  ;;  %v1114_v57 = vmul.f32 %v4063_v25, %v1106_v53 }
 0x9de   :  { %4509 = vmatmul.mubr.msk.f32.vlgmr.msra.gmra.mrb[12].mxu1 %vm45_vm0, %v5730_v54  ;;  %v5738_v60 = vadd.f32 %v4064_v45, %v1115_v55 }
 0x9df   :  { %v5736_v58 = vadd.f32 %v4064_v45, %v1114_v57 }
 0x9e1   :  { %4511 = vmatprep.mubr.msk.f32.mxu1 %vm45_vm0, %v5736_v58 }
 0x9e2   :  { %4512 = vmatmul.mubr.msk.f32.gmra.mrb[14].mxu1 %vm45_vm0, %v5738_v60 }
 0xab1   :  { %v4510_v63 = vpop.f32.mrb[12].mxu1 }
 0xab2   :  { %v1217_v0 = vadd.f32 %v4510_v63, %v4068_v61  ;;  %v1211_v1 = vpop.f32.mrb[13].mxu1 }
 0xab3   :  { %v1212_v3 = vadd.f32 %v4068_v61, %v1211_v1 }
 0xab4   :  { %1236 = vrot.lane.b32.xlu0 %v1217_v0, %s5418_s0 }
 0xab5   :  { %1234 = vrot.lane.b32.xlu1 %v1212_v3, %s5418_s0  ;;  %v4513_v4 = vpop.f32.mrb[14].mxu1  ;;  %4530 = vmatprep.mubr.msk.f32.mxu0 %vm171_vm1, %v1212_v3  ;;  %v5750_v6 = vpack.i.bf16 %v1217_v0, %v1212_v3 }
 0xab6   :  { %v1221_v8 = vpop.f32.mrb[15].mxu1  ;;  %v1227_v12 = vadd.f32 %v4513_v4, %v4068_v61 }
 0xab7   :  { %v1222_v9 = vadd.f32 %v4068_v61, %v1221_v8 }
 0xab8   :  { %5259 = vrot.lane.b32.xlu0 %v5750_v6, %s5419_s11 }
 0xab9   :  { %1238 = vrot.lane.b32.xlu1 %v1222_v9, %s5418_s0  ;;  %v5756_v15 = vpack.i.bf16 %v1227_v12, %v1222_v9 }
 0xabd   :  { %1240 = vrot.lane.b32.xlu1 %v1227_v12, %s5418_s0 }
 0xac1   :  { %5264 = vrot.lane.b32.xlu1 %v5756_v15, %s5419_s11 }
 0xb26   :  { %v1237_v16 = vpop.permute.xlu0 %1236 }
 0xb27   :  { %v1235_v17 = vpop.permute.xlu1 %1234 }
 0xb28   :  { %v5760_v18 = vpack.i.bf16 %v1237_v16, %v1235_v17 }
 0xb2a   :  { %v5260_v19 = vpop.permute.xlu0 %5259  ;;  %5269 = vrot.lane.b32.xlu0 %v5760_v18, %s5419_s11 }
 0xb2b   :  { %v5262_v20 = vunpack.i.h.bf16 %v5260_v19  ;;  %v5261_v21 = vunpack.i.l.bf16 %v5260_v19  ;;  %v1239_v22 = vpop.permute.xlu1 %1238 }
 0xb2d   :  { %v4928_v23 = vpack.c.bf16 %v5262_v20, %v5261_v21 }
 0xb2f   :  { %4930 = vmatprep.subr.msk.bf16.mxu0 %vm5520_vm2, %v4928_v23  ;;  %v1241_v26 = vpop.permute.xlu1 %1240 }
 0xb30   :  { %v5766_v27 = vpack.i.bf16 %v1241_v26, %v1239_v22  ;;  %4933 = vmatpush3.bf16.xpose.msk.msra.mxu0 %vm5520_vm2, %v4928_v23 }
 0xb32   :  { %5274 = vrot.lane.b32.xlu1 %v5766_v27, %s5419_s11 }
 0xb33   :  { %v5265_v28 = vpop.permute.xlu1 %5264 }
 0xb34   :  { %v5267_v10 = vunpack.i.h.bf16 %v5265_v28  ;;  %v5266_v7 = vunpack.i.l.bf16 %v5265_v28 }
 0xb36   :  { %v4934_v30 = vpack.c.bf16 %v5267_v10, %v5266_v7 }
 0xb38   :  { %4936 = vmatprep.subr.msk.bf16.mxu0 %vm5520_vm2, %v4934_v30 }
 0xb39   :  { %4939 = vmatpush3.bf16.xpose.msk.msra.mxu0 %vm5520_vm2, %v4934_v30 }
 0xb9c   :  { %v5270_v31 = vpop.permute.xlu0 %5269 }
 0xb9d   :  { %v5272_v33 = vunpack.i.h.bf16 %v5270_v31  ;;  %v5271_v34 = vunpack.i.l.bf16 %v5270_v31 }
 0xb9f   :  { %v4940_v29 = vpack.c.bf16 %v5272_v33, %v5271_v34 }
 0xba1   :  { %4942 = vmatprep.subr.msk.bf16.mxu0 %vm5520_vm2, %v4940_v29 }
 0xba2   :  { %4945 = vmatpush3.bf16.xpose.msk.msra.mxu0 %vm5520_vm2, %v4940_v29 }
 0xba4   :  { %v5275_v36 = vpop.permute.xlu1 %5274 }
 0xba5   :  { %v5277_v32 = vunpack.i.h.bf16 %v5275_v36  ;;  %v5276_v37 = vunpack.i.l.bf16 %v5275_v36 }
 0xba7   :  { %v4946_v38 = vpack.c.bf16 %v5277_v32, %v5276_v37 }
 0xba9   :  { %4948 = vmatprep.subr.msk.bf16.mxu0 %vm5520_vm2, %v4946_v38 }
 0xbaa   :  { %4951 = vmatpush3.bf16.xpose.msk.msra.mxu0 %vm5520_vm2, %v4946_v38 }
 0xbb1   :  { %4531 = vmatmul.mubr.msk.f32.vlgmr.msra.gmra.mrb[20].mxu0 %vm171_vm1, %v1217_v0 }
 0xbb2   :  { %4533 = vmatprep.mubr.msk.f32.mxu0 %vm171_vm1, %v1222_v9 }
 0xbb5   :  { %4534 = vmatmul.mubr.msk.f32.gmra.mrb[22].mxu0 %vm171_vm1, %v1227_v12 }
 0xbb6   :  { %4536 = vmatprep.mubr.msk.f32.mxu0 %vm171_vm1, %v1235_v17 }
 0xbb9   :  { %4537 = vmatmul.mubr.msk.f32.gmra.mrb[24].mxu0 %vm171_vm1, %v1237_v16 }
 0xbba   :  { %4539 = vmatprep.mubr.msk.f32.mxu0 %vm171_vm1, %v1239_v22 }
 0xbbd   :  { %4540 = vmatmul.mubr.msk.f32.gmra.mrb[26].mxu0 %vm171_vm1, %v1241_v26 }
 0xc84   :  { %v4532_v24 = vpop.f32.mrb[20].mxu0 }
 0xc85   :  { %v1362_v14 = vadd.f32 %v4532_v24, %v5552_v49  ;;  %v1356_v39 = vpop.f32.mrb[21].mxu0 }
 0xc86   :  { %v1357_v35 = vadd.f32 %v1356_v39, %v5557_v50 }
 0xc87   :  { %v1398_v11 = vsel %vm309_vm3, %v1362_v14, -inf }
 0xc88   :  { %1399 = vmax.xlane.f32.xlu1 %v1398_v11  ;;  %v4535_v40 = vpop.f32.mrb[22].mxu0  ;;  %v1395_v25 = vsel %vm309_vm3, %v1357_v35, -inf }
 0xc89   :  { %v1366_v41 = vpop.f32.mrb[23].mxu0  ;;  %1396 = vmax.xlane.f32.xlu0 %v1395_v25  ;;  %v1372_v44 = vadd.f32 %v4535_v40, %v5571_v59 }
 0xc8a   :  { %v1367_v42 = vadd.f32 %v1366_v41, %v5565_v56 }
 0xc8b   :  { %v1404_v52 = vsel %vm309_vm3, %v1372_v44, -inf }
 0xc8c   :  { %v4538_v45 = vpop.f32.mrb[24].mxu0  ;;  %v1401_v46 = vsel %vm309_vm3, %v1367_v42, -inf }
 0xc8d   :  { %v1376_v47 = vpop.f32.mrb[25].mxu0  ;;  %1402 = vmax.xlane.f32.xlu0 %v1401_v46  ;;  %v1382_v50 = vadd.f32 %v4538_v45, %v5584_v2 }
 0xc8e   :  { %v1377_v49 = vadd.f32 %v1376_v47, %v5577_v62 }
 0xc8f   :  { %v1410_v57 = vsel %vm309_vm3, %v1382_v50, -inf }
 0xc90   :  { %v4541_v48 = vpop.f32.mrb[26].mxu0  ;;  %v1407_v51 = vsel %vm309_vm3, %v1377_v49, -inf }
 0xc91   :  { %v1386_v53 = vpop.f32.mrb[27].mxu0  ;;  %1408 = vmax.xlane.f32.xlu1 %v1407_v51  ;;  %1405 = vmax.xlane.f32.xlu0 %v1404_v52  ;;  %v1392_v59 = vadd.f32 %v4541_v48, %v5598_v13 }
 0xc92   :  { %v1387_v56 = vadd.f32 %v1386_v53, %v5590_v5 }
 0xc93   :  { %v1416_v62 = vsel %vm309_vm3, %v1392_v59, -inf }
 0xc94   :  { %v1413_v55 = vsel %vm309_vm3, %v1387_v56, -inf }
 0xc95   :  { %1414 = vmax.xlane.f32.xlu1 %v1413_v55  ;;  %1411 = vmax.xlane.f32.xlu0 %v1410_v57 }
 0xc99   :  { %1417 = vmax.xlane.f32.xlu0 %v1416_v62 }
 0xca6   :  { %5279 = vrot.lane.b32.xlu1 %v5750_v6, %s5420_s28 }
 0xd15   :  { %v1400_v2 = vpop.xlane.xlu1 %1399 }
 0xd16   :  { %v1420_v61 = vsub.f32 %v1362_v14, %v1400_v2  ;;  %v1397_v63 = vpop.xlane.xlu0 %1396 }
 0xd17   :  { %v1419_v0 = vsub.f32 %v1357_v35, %v1397_v63 }
 0xd18   :  { %v1429_v1 = vmul.f32 1.442695, %v1420_v61 }
 0xd19   :  { %v1427_v5 = vmul.f32 1.442695, %v1419_v0 }
 0xd1a   :  { %5346 = vpow2.f32 %v1429_v1  ;;  %v1403_v13 = vpop.xlane.xlu0 %1402 }
 0xd1b   :  { %5348 = vpow2.f32 %v1427_v5  ;;  %v1421_v3 = vsub.f32 %v1367_v42, %v1403_v13 }
 0xd1d   :  { %v1431_v4 = vmul.f32 1.442695, %v1421_v3 }
 0xd1e   :  { %v1409_v8 = vpop.xlane.xlu1 %1408  ;;  %v1406_v9 = vpop.xlane.xlu0 %1405 }
 0xd1f   :  { %5350 = vpow2.f32 %v1431_v4  ;;  %v1423_v12 = vsub.f32 %v1377_v49, %v1409_v8  ;;  %v1422_v16 = vsub.f32 %v1372_v44, %v1406_v9  ;;  %v4097_v9 = vld [vmem:[%s6173_s2 + $0x60] sm:$0xff] }
 0xd21   :  { %v1435_v17 = vmul.f32 1.442695, %v1423_v12  ;;  %v1433_v19 = vmul.f32 1.442695, %v1422_v16 }
 0xd22   :  { %v1415_v20 = vpop.xlane.xlu1 %1414  ;;  %v1412_v6 = vpop.xlane.xlu0 %1411 }
 0xd23   :  { %5352 = vpow2.f32 %v1435_v17  ;;  %v1424_v21 = vsub.f32 %v1382_v50, %v1412_v6  ;;  %v1425_v10 = vsub.f32 %v1387_v56, %v1415_v20 }
 0xd24   :  { %v5809_v22 = vpop.eup %5346  ;;  %5354 = vpow2.f32 %v1433_v19 }
 0xd25   :  { %v5349_v23 = vpop.eup %5348  ;;  %v1437_v26 = vmul.f32 1.442695, %v1424_v21  ;;  %v1446_v28 = vsel %vm309_vm3, %v5809_v22, 0.0  ;;  %v1439_v38 = vmul.f32 1.442695, %v1425_v10 }
 0xd26   :  { %v5280_v7 = vpop.permute.xlu1 %5279  ;;  %1447 = vadd.xlane.f32.xlu0 %v1446_v28  ;;  %v1418_v30 = vpop.xlane.xlu0 %1417  ;;  %v1443_v31 = vsel %vm309_vm3, %v5349_v23, 0.0  ;;  %v4098_v28 = vld [vmem:[%s6173_s2 + $0x68] sm:$0xff] }
 0xd27   :  { %v5282_v33 = vunpack.i.h.bf16 %v5280_v7  ;;  %v5281_v34 = vunpack.i.l.bf16 %v5280_v7  ;;  %v1426_v29 = vsub.f32 %v1392_v59, %v1418_v30  ;;  %1444 = vadd.xlane.f32.xlu1 %v1443_v31  ;;  %5356 = vpow2.f32 %v1437_v26 }
 0xd29   :  { %v5351_v36 = vpop.eup %5350  ;;  %v4952_v32 = vpack.c.bf16 %v5282_v33, %v5281_v34  ;;  %v1441_v37 = vmul.f32 1.442695, %v1426_v29 }
 0xd2a   :  { %v1449_v24 = vsel %vm309_vm3, %v5351_v36, 0.0 }
 0xd2b   :  { %5358 = vpow2.f32 %v1441_v37  ;;  %4953 = vmatprep.subr.bf16.mxu0 %v4952_v32  ;;  %5136 = vmatprep.subr.bf16.mxu1 %v4952_v32 }
 0xd2c   :  { %1450 = vadd.xlane.f32.xlu1 %v1449_v24  ;;  %4955 = vmatpush3.bf16.msra.mxu0 %v4952_v32  ;;  %5360 = vpow2.f32 %v1439_v38 }
 0xd2d   :  { %v5815_v14 = vpop.eup %5352  ;;  %5140 = vmatpush3.bf16.msra.mxu1 %v4952_v32  ;;  %v4104_v32 = vld [vmem:[%s6174_s3 + $0x9] ss:$0 sm:$0xff] }
 0xd2e   :  { %v5817_v39 = vpop.eup %5354  ;;  %v1455_v35 = vsel %vm309_vm3, %v5815_v14, 0.0 }
 0xd2f   :  { %v1452_v11 = vsel %vm309_vm3, %v5817_v39, 0.0 }
 0xd30   :  { %1456 = vadd.xlane.f32.xlu1 %v1455_v35  ;;  %1453 = vadd.xlane.f32.xlu0 %v1452_v11 }
 0xd31   :  { %v5823_v40 = vpop.eup %5356 }
 0xd32   :  { %v1458_v25 = vsel %vm309_vm3, %v5823_v40, 0.0 }
 0xd34   :  { %1459 = vadd.xlane.f32.xlu0 %v1458_v25 }
 0xd35   :  { %v5827_v41 = vpop.eup %5358 }
 0xd36   :  { %v1464_v42 = vsel %vm309_vm3, %v5827_v41, 0.0  ;;  %v5831_v44 = vpop.eup %5360 }
 0xd37   :  { %v1461_v45 = vsel %vm309_vm3, %v5831_v44, 0.0 }
 0xd38   :  { %1465 = vadd.xlane.f32.xlu0 %v1464_v42 }
 0xd3c   :  { %1462 = vadd.xlane.f32.xlu0 %v1461_v45 }
 0xd41   :  { %5289 = vrot.lane.b32.xlu1 %v5760_v18, %s5420_s28 }
 0xd45   :  { %5294 = vrot.lane.b32.xlu1 %v5766_v27, %s5420_s28 }
 0xd52   :  { %5284 = vrot.lane.b32.xlu0 %v5756_v15, %s5420_s28 }
 0xdb3   :  { %v1448_v47 = vpop.xlane.xlu0 %1447 }
 0xdb4   :  { %v1445_v46 = vpop.xlane.xlu1 %1444 }
 0xdb5   :  { %5362 = vrcp.f32 %v1445_v46 }
 0xdb9   :  { %v1451_v49 = vpop.xlane.xlu1 %1450 }
 0xdba   :  { %5364 = vrcp.f32 %v1451_v49 }
 0xdbb   :  { %5366 = vrcp.f32 %v1448_v47 }
 0xdbd   :  { %v1454_v50 = vpop.xlane.xlu0 %1453  ;;  %v1457_v53 = vpop.xlane.xlu1 %1456 }
 0xdbe   :  { %5368 = vrcp.f32 %v1454_v50 }
 0xdbf   :  { %v5363_v48 = vpop.eup %5362  ;;  %5370 = vrcp.f32 %v1457_v53 }
 0xdc0   :  { %v1475_v51 = vmul.f32 %v5363_v48, %v5349_v23 }
 0xdc1   :  { %v1460_v52 = vpop.xlane.xlu0 %1459  ;;  %v5290_v27 = vpop.permute.xlu1 %5289 }
 0xdc2   :  { %4558 = vmatprep.mubr.msk.f32.mxu0 %vm309_vm3, %v1475_v51  ;;  %v5292_v57 = vunpack.i.h.bf16 %v5290_v27  ;;  %v5291_v62 = vunpack.i.l.bf16 %v5290_v27  ;;  %5372 = vrcp.f32 %v1460_v52 }
 0xdc4   :  { %v5365_v56 = vpop.eup %5364  ;;  %v4960_v1 = vpack.c.bf16 %v5292_v57, %v5291_v62 }
 0xdc5   :  { %v1466_v18 = vpop.xlane.xlu0 %1465  ;;  %v1477_v59 = vmul.f32 %v5365_v56, %v5351_v36  ;;  %v5295_v63 = vpop.permute.xlu1 %5294 }
 0xdc6   :  { %v5297_v5 = vunpack.i.h.bf16 %v5295_v63  ;;  %v5296_v13 = vunpack.i.l.bf16 %v5295_v63  ;;  %v5367_v4 = vpop.eup %5366 }
 0xdc7   :  { %4561 = vmatprep.mubr.msk.f32.mxu1 %vm309_vm3, %v1477_v59  ;;  %v1476_v16 = vmul.f32 %v5367_v4, %v5809_v22 }
 0xdc8   :  { %v4964_v3 = vpack.c.bf16 %v5297_v5, %v5296_v13  ;;  %v5369_v8 = vpop.eup %5368  ;;  %v4121_v13 = vld [vmem:[%s6173_s2 + $0x80] sm:$0xff] }
 0xdc9   :  { %v1463_v55 = vpop.xlane.xlu0 %1462  ;;  %v5371_v12 = vpop.eup %5370  ;;  %v1478_v17 = vmul.f32 %v5369_v8, %v5817_v39 }
 0xdca   :  { %5374 = vrcp.f32 %v1463_v55  ;;  %v1479_v20 = vmul.f32 %v5371_v12, %v5815_v14 }
 0xdcb   :  { %5376 = vrcp.f32 %v1466_v18 }
 0xdcc   :  { %v5373_v19 = vpop.eup %5372 }
 0xdcd   :  { %v5285_v15 = vpop.permute.xlu0 %5284  ;;  %v1480_v21 = vmul.f32 %v5373_v19, %v5823_v40 }
 0xdce   :  { %v5287_v2 = vunpack.i.h.bf16 %v5285_v15  ;;  %v5286_v61 = vunpack.i.l.bf16 %v5285_v15 }
 0xdd0   :  { %v4956_v0 = vpack.c.bf16 %v5287_v2, %v5286_v61 }
 0xdd2   :  { %4957 = vmatprep.subr.bf16.mxu0 %v4956_v0  ;;  %5137 = vmatprep.subr.bf16.mxu1 %v4956_v0 }
 0xdd3   :  { %4959 = vmatpush3.bf16.msra.mxu0 %v4956_v0  ;;  %5141 = vmatpush3.bf16.msra.mxu1 %v4956_v0  ;;  %v4113_v0 = vld [vmem:[%s6173_s2 + $0x70] sm:$0xff] }
 0xdd4   :  { %4961 = vmatprep.subr.bf16.mxu0 %v4960_v1  ;;  %5138 = vmatprep.subr.bf16.mxu1 %v4960_v1  ;;  %v5375_v6 = vpop.eup %5374 }
 0xdd5   :  { %v5377_v23 = vpop.eup %5376  ;;  %v1481_v26 = vmul.f32 %v5375_v6, %v5831_v44 }
 0xdd6   :  { %v1482_v22 = vmul.f32 %v5377_v23, %v5827_v41 }
 0xdd7   :  { %4963 = vmatpush3.bf16.msra.mxu0 %v4960_v1  ;;  %5142 = vmatpush3.bf16.msra.mxu1 %v4960_v1  ;;  %v4114_v1 = vld [vmem:[%s6173_s2 + $0x78] sm:$0xff] }
 0xdd8   :  { %4965 = vmatprep.subr.bf16.mxu0 %v4964_v3  ;;  %5139 = vmatprep.subr.bf16.mxu1 %v4964_v3  ;;  %v4968_v5 = vpack.c.bf16 %v4114_v1, %v4113_v0 }
 0xddb   :  { %4967 = vmatpush3.bf16.msra.mxu0 %v4964_v3  ;;  %5143 = vmatpush3.bf16.msra.mxu1 %v4964_v3  ;;  %v4122_v3 = vld [vmem:[%s6173_s2 + $0x88] sm:$0xff] }
 0xddc   :  { %4570 = vmatprep.subr.mxu1 %v4097_v9  ;;  %4969 = vmatprep.subr.bf16.mxu0 %v4968_v5  ;;  %v4972_v4 = vpack.c.bf16 %v4122_v3, %v4121_v13 }
 0xdde   :  { %4559 = vmatmul.mubr.msk.f32.vlgmr.msra.gmra.mrb[28].mxu0 %vm309_vm3, %v1476_v16  ;;  %4562 = vmatmul.mubr.msk.f32.vlgmr.msra.gmra.mrb[16].mxu1 %vm309_vm3, %v1478_v17 }
 0xddf   :  { %4564 = vmatprep.mubr.msk.f32.mxu1 %vm309_vm3, %v1479_v20  ;;  %4571 = vmatpush3.msra.mxu1 %v4097_v9 }
 0xde0   :  { %4578 = vmatprep.subr.mxu1 %v4098_v28  ;;  %4971 = vmatpush3.bf16.msra.mxu0 %v4968_v5 }
 0xde2   :  { %4565 = vmatmul.mubr.msk.f32.gmra.mrb[18].mxu1 %vm309_vm3, %v1480_v21 }
 0xde3   :  { %4567 = vmatprep.mubr.msk.f32.mxu1 %vm309_vm3, %v1481_v26 }
 0xde6   :  { %4568 = vmatmul.mubr.msk.f32.gmra.mrb[20].mxu1 %vm309_vm3, %v1482_v22 }
 0xeb1   :  { %v4560_v10 = vpop.f32.mrb[28].mxu0  ;;  %v4563_v7 = vpop.f32.mrb[16].mxu1 }
 0xeb2   :  { %v1597_v30 = vpop.f32.mrb[29].mxu0  ;;  %v1607_v31 = vpop.f32.mrb[17].mxu1 }
 0xeb3   :  { %4572 = vmatprep.mubr.msk.f32.mxu1 %vm171_vm1, %v1597_v30 }
 0xeb4   :  { %4573 = vmatmul.mubr.msk.f32.vlgmr.msra.gmra.mrb[22].mxu1 %vm171_vm1, %v4560_v10  ;;  %v4111_v10 = vld [vmem:[%s6174_s3 + $0xc] ss:$0 sm:$0xff] }
 0xeb5   :  { %v4566_v33 = vpop.f32.mrb[18].mxu1  ;;  %4575 = vmatprep.mubr.msk.f32.mxu1 %vm171_vm1, %v1607_v31  ;;  %4579 = vmatpush3.msra.mxu1 %v4098_v28 }
 0xeb6   :  { %v1617_v34 = vpop.f32.mrb[19].mxu1  ;;  %4973 = vmatprep.subr.bf16.mxu1 %v4972_v4 }
 0xeb8   :  { %4576 = vmatmul.mubr.msk.f32.gmra.mrb[24].mxu1 %vm171_vm1, %v4563_v7 }
 0xeb9   :  { %v4569_v29 = vpop.f32.mrb[20].mxu1  ;;  %4580 = vmatprep.mubr.msk.f32.mxu1 %vm171_vm1, %v1617_v34 }
 0xeba   :  { %v1627_v36 = vpop.f32.mrb[21].mxu1 }
 0xebc   :  { %4581 = vmatmul.mubr.msk.f32.vlgmr.msra.gmra.mrb[22].mxu1 %vm171_vm1, %v4566_v33  ;;  %v4112_v33 = vld [vmem:[%s6174_s3 + $0xd] ss:$0 sm:$0xff] }
 0xebd   :  { %4583 = vmatprep.mubr.msk.f32.mxu1 %vm171_vm1, %v1627_v36  ;;  %4975 = vmatpush3.bf16.msra.mxu1 %v4972_v4 }
 0xec0   :  { %4584 = vmatmul.mubr.msk.f32.gmra.mrb[24].mxu1 %vm171_vm1, %v4569_v29 }
 0xf8f   :  { %v4582_v37 = vpop.f32.mrb[22].mxu1 }
 0xf90   :  { %v5148_v38 = vadd.f32 %v4582_v37, %v4104_v32  ;;  %v1822_v24 = vpop.f32.mrb[23].mxu1 }
 0xf91   :  { %v5149_v14 = vadd.f32 %v4104_v32, %v1822_v24 }
 0xf92   :  { %v1846_v39 = vadd.f32 %v5148_v38, %v5730_v54 }
 0xf93   :  { %v4585_v35 = vpop.f32.mrb[24].mxu1  ;;  %v1845_v11 = vadd.f32 %v5149_v14, %v5728_v43 }
 0xf94   :  { %v5150_v40 = vadd.f32 %v4585_v35, %v4104_v32  ;;  %v1832_v25 = vpop.f32.mrb[25].mxu1  ;;  %v1854_v41 = vsel %vm45_vm0, %v1846_v39, 0.0 }
 0xf95   :  { %v5151_v42 = vadd.f32 %v4104_v32, %v1832_v25  ;;  %1855 = vadd.xlane.f32.xlu0 %v1854_v41  ;;  %v1851_v44 = vsel %vm45_vm0, %v1845_v11, 0.0  ;;  %v4123_v25 = vld [vmem:[%s6173_s2 + $0x90] sm:$0xff]  ;;  %v4124_v41 = vld [vmem:[%s6173_s2 + $0x98] sm:$0xff] }
 0xf96   :  { %1852 = vadd.xlane.f32.xlu1 %v1851_v44  ;;  %v1848_v45 = vadd.f32 %v5150_v40, %v5738_v60  ;;  %v4116_v44 = vld [vmem:[%s6174_s3 + $0xa] ss:$0 sm:$0xff] }
 0xf97   :  { %v1847_v46 = vadd.f32 %v5151_v42, %v5736_v58  ;;  %v4976_v42 = vpack.c.bf16 %v4124_v41, %v4123_v25 }
 0xf98   :  { %v1860_v47 = vsel %vm45_vm0, %v1848_v45, 0.0 }
 0xf99   :  { %1861 = vadd.xlane.f32.xlu0 %v1860_v47  ;;  %v1857_v54 = vsel %vm45_vm0, %v1847_v46, 0.0  ;;  %4977 = vmatprep.subr.bf16.mxu1 %v4976_v42 }
 0xf9a   :  { %1858 = vadd.xlane.f32.xlu1 %v1857_v54  ;;  %4979 = vmatpush3.bf16.msra.mxu1 %v4976_v42 }
0x1022   :  { %v1856_v43 = vpop.xlane.xlu0 %1855 }
0x1023   :  { %v1864_v49 = vmul.f32 0.0625, %v1856_v43  ;;  %v1853_v50 = vpop.xlane.xlu1 %1852 }
0x1024   :  { %v1863_v48 = vmul.f32 0.0625, %v1853_v50 }
0x1025   :  { %v1868_v51 = vsub.f32 %v1846_v39, %v1864_v49 }
0x1026   :  { %v1867_v52 = vsub.f32 %v1845_v11, %v1863_v48  ;;  %v1862_v53 = vpop.xlane.xlu0 %1861 }
0x1027   :  { %v1866_v56 = vmul.f32 0.0625, %v1862_v53  ;;  %v1859_v18 = vpop.xlane.xlu1 %1858  ;;  %v1872_v59 = vmul.f32 %v1868_v51, %v1868_v51 }
0x1028   :  { %v1865_v27 = vmul.f32 0.0625, %v1859_v18  ;;  %v1871_v60 = vmul.f32 %v1867_v52, %v1867_v52  ;;  %v4126_v18 = vld [vmem:[%s6174_s3 + $0xb] ss:$0 sm:$0xff] }
0x1029   :  { %v1870_v55 = vsub.f32 %v1848_v45, %v1866_v56  ;;  %v1878_v58 = vsel %vm45_vm0, %v1872_v59, 0.0 }
0x102a   :  { %v1869_v15 = vsub.f32 %v1847_v46, %v1865_v27  ;;  %1879 = vadd.xlane.f32.xlu0 %v1878_v58  ;;  %v1875_v57 = vsel %vm45_vm0, %v1871_v60, 0.0 }
0x102b   :  { %1876 = vadd.xlane.f32.xlu1 %v1875_v57  ;;  %v1874_v62 = vmul.f32 %v1870_v55, %v1870_v55 }
0x102c   :  { %v1873_v2 = vmul.f32 %v1869_v15, %v1869_v15 }
0x102d   :  { %v1884_v61 = vsel %vm45_vm0, %v1874_v62, 0.0 }
0x102e   :  { %1885 = vadd.xlane.f32.xlu0 %v1884_v61  ;;  %v1881_v63 = vsel %vm45_vm0, %v1873_v2, 0.0 }
0x102f   :  { %1882 = vadd.xlane.f32.xlu1 %v1881_v63 }
0x10b7   :  { %v1880_v8 = vpop.xlane.xlu0 %1879 }
0x10b8   :  { %v1888_v9 = vmul.f32 0.0625, %v1880_v8  ;;  %v1877_v12 = vpop.xlane.xlu1 %1876 }
0x10b9   :  { %v1887_v16 = vmul.f32 0.0625, %v1877_v12 }
0x10ba   :  { %v1892_v17 = vadd.f32 1e-05, %v1888_v9 }
0x10bb   :  { %v1891_v19 = vadd.f32 1e-05, %v1887_v16  ;;  %v1886_v20 = vpop.xlane.xlu0 %1885 }
0x10bc   :  { %5378 = vrsqrt.f32 %v1892_v17  ;;  %v1890_v6 = vmul.f32 0.0625, %v1886_v20  ;;  %v1883_v21 = vpop.xlane.xlu1 %1882 }
0x10bd   :  { %5380 = vrsqrt.f32 %v1891_v19  ;;  %v1889_v23 = vmul.f32 0.0625, %v1883_v21 }
0x10be   :  { %v1894_v26 = vadd.f32 1e-05, %v1890_v6 }
0x10bf   :  { %v1893_v22 = vadd.f32 1e-05, %v1889_v23 }
0x10c0   :  { %5382 = vrsqrt.f32 %v1894_v26 }
0x10c1   :  { %5384 = vrsqrt.f32 %v1893_v22 }
0x10c6   :  { %v5379_v28 = vpop.eup %5378 }
0x10c7   :  { %v5381_v7 = vpop.eup %5380  ;;  %v1900_v30 = vmul.f32 %v5379_v28, %v1868_v51 }
0x10c8   :  { %v1899_v31 = vmul.f32 %v5381_v7, %v1867_v52 }
0x10c9   :  { %v1908_v34 = vmul.f32 %v4111_v10, %v1900_v30 }
0x10ca   :  { %v5383_v29 = vpop.eup %5382  ;;  %v1907_v36 = vmul.f32 %v4111_v10, %v1899_v31 }
0x10cb   :  { %v5385_v32 = vpop.eup %5384  ;;  %v1902_v37 = vmul.f32 %v5383_v29, %v1870_v55  ;;  %v1916_v14 = vadd.f32 %v4112_v33, %v1908_v34  ;;  %v2207_v29 = vld [vmem:[%s6172_s1 + $0x80] sm:$0xff] }
0x10cc   :  { %v1915_v38 = vadd.f32 %v4112_v33, %v1907_v36  ;;  %v1901_v24 = vmul.f32 %v5385_v32, %v1869_v15  ;;  %v2208_v36 = vld [vmem:[%s6172_s1 + $0x88] sm:$0xff]  ;;  %v2236_v32 = vand.u32 4294901760, %v2207_v29 }
0x10cd   :  { %v1910_v39 = vmul.f32 %v4111_v10, %v1902_v37  ;;  %v2239_v37 = vand.u32 4294901760, %v2208_v36 }
0x10ce   :  { %4590 = vmatprep.mubr.msk.f32.mxu0 %vm45_vm0, %v1915_v38  ;;  %v1909_v35 = vmul.f32 %v4111_v10, %v1901_v24  ;;  %v2344_v24 = vsub.f32 %v2207_v29, %v2236_v32 }
0x10cf   :  { %4591 = vmatmul.mubr.msk.f32.vlgmr.msra.gmra.mrb[30].mxu0 %vm45_vm0, %v1916_v14  ;;  %v1918_v40 = vadd.f32 %v4112_v33, %v1910_v39 }
0x10d0   :  { %v1917_v11 = vadd.f32 %v4112_v33, %v1909_v35  ;;  %v2345_v39 = vand.u32 4294901760, %v2344_v24 }
0x10d2   :  { %4593 = vmatprep.mubr.msk.f32.mxu0 %vm45_vm0, %v1917_v11 }
0x10d3   :  { %4594 = vmatmul.mubr.msk.f32.gmra.mrb[32].mxu0 %vm45_vm0, %v1918_v40 }
0x11a2   :  { %v4592_v45 = vpop.f32.mrb[30].mxu0 }
0x11a3   :  { %v2010_v46 = vadd.f32 %v4592_v45, %v4116_v44  ;;  %v2004_v47 = vpop.f32.mrb[31].mxu0 }
0x11a4   :  { %v2005_v54 = vadd.f32 %v4116_v44, %v2004_v47  ;;  %v5971_v47 = vld [vmem:[%s6172_s1 + $0x98] sm:$0xff] }
0x11a5   :  { %v2024_v50 = vmax.f32 %v2010_v46, 0.0  ;;  %v5966_v46 = vld [vmem:[%s6172_s1 + $0x90] sm:$0xff] }
0x11a6   :  { %v2023_v43 = vmax.f32 %v2005_v54, 0.0  ;;  %v4595_v49 = vpop.f32.mrb[32].mxu0  ;;  %v2840_v54 = vand.u32 4294901760, %v5966_v46 }
0x11a7   :  { %v2020_v48 = vadd.f32 %v4595_v49, %v4116_v44  ;;  %v2014_v51 = vpop.f32.mrb[33].mxu0 }
0x11a8   :  { %v2015_v52 = vadd.f32 %v4116_v44, %v2014_v51  ;;  %4604 = vmatprep.mubr.msk.f32.mxu1 %vm952_vm4, %v2023_v43  ;;  %v2843_v43 = vand.u32 4294901760, %v5971_v47 }
0x11a9   :  { %4605 = vmatmul.mubr.msk.f32.vlgmr.msra.gmra.mrb[26].mxu1 %vm952_vm4, %v2024_v50  ;;  %v2026_v56 = vmax.f32 %v2020_v48, 0.0 }
0x11aa   :  { %v2025_v53 = vmax.f32 %v2015_v52, 0.0  ;;  %v5979_v49 = vpack.c.bf16 %v2843_v43, %v2840_v54 }
0x11ac   :  { %4607 = vmatprep.mubr.msk.f32.mxu1 %vm952_vm4, %v2025_v53  ;;  %5005 = vmatprep.subr.bf16.mxu1 %v5979_v49 }
0x11ad   :  { %4608 = vmatmul.mubr.msk.f32.gmra.mrb[28].mxu1 %vm952_vm4, %v2026_v56 }
0x11ae   :  { %5007 = vmatpush3.bf16.msra.mxu1 %v5979_v49 }
0x127c   :  { %v4606_v59 = vpop.f32.mrb[26].mxu1 }
0x127d   :  { %v2120_v27 = vadd.f32 %v4606_v59, %v4126_v18  ;;  %v2114_v60 = vpop.f32.mrb[27].mxu1 }
0x127e   :  { %v2115_v55 = vadd.f32 %v4126_v18, %v2114_v60 }
0x127f   :  { %v2134_v58 = vadd.f32 %v2120_v27, %v1916_v14  ;;  %v2351_v14 = vsub.f32 %v2208_v36, %v2239_v37 }
0x1280   :  { %v4609_v15 = vpop.f32.mrb[28].mxu1  ;;  %v2133_v57 = vadd.f32 %v2115_v55, %v1915_v38  ;;  %v5952_v38 = vpack.c.bf16 %v2239_v37, %v2236_v32 }
0x1281   :  { %v2130_v62 = vadd.f32 %v4609_v15, %v4126_v18  ;;  %v2124_v2 = vpop.f32.mrb[29].mxu1  ;;  %v2142_v61 = vsel %vm45_vm0, %v2134_v58, 0.0  ;;  %v2352_v35 = vand.u32 4294901760, %v2351_v14  ;;  %v5959_v44 = vpack.c.bf16 %v2351_v14, %v2344_v24 }
0x1282   :  { %v2125_v63 = vadd.f32 %v4126_v18, %v2124_v2  ;;  %2143 = vadd.xlane.f32.xlu0 %v2142_v61  ;;  %v2139_v0 = vsel %vm45_vm0, %v2133_v57, 0.0  ;;  %4981 = vmatprep.subr.bf16.mxu0 %v5952_v38 }
0x1283   :  { %2140 = vadd.xlane.f32.xlu1 %v2139_v0  ;;  %v2136_v1 = vadd.f32 %v2130_v62, %v1918_v40  ;;  %4983 = vmatpush3.bf16.msra.mxu0 %v5952_v38  ;;  %v2353_v40 = vsub.f32 %v2351_v14, %v2352_v35  ;;  %v5961_v45 = vpack.c.bf16 %v2352_v35, %v2345_v39 }
0x1284   :  { %v2135_v5 = vadd.f32 %v2125_v63, %v1917_v11  ;;  %v2346_v11 = vsub.f32 %v2344_v24, %v2345_v39  ;;  %v4134_v63 = vld [vmem:[%s6174_s3 + $0xf] ss:$0 sm:$0xff] }
0x1285   :  { %v2148_v13 = vsel %vm45_vm0, %v2136_v1, 0.0  ;;  %v2354_v41 = vand.u32 4294901760, %v2353_v40 }
0x1286   :  { %2149 = vadd.xlane.f32.xlu0 %v2148_v13  ;;  %v2145_v3 = vsel %vm45_vm0, %v2135_v5, 0.0  ;;  %v2347_v25 = vand.u32 4294901760, %v2346_v11 }
0x1287   :  { %2146 = vadd.xlane.f32.xlu1 %v2145_v3 }
0x1288   :  { %v5956_v42 = vpack.c.bf16 %v2354_v41, %v2347_v25  ;;  %v2215_v41 = vld [vmem:[%s6172_s1 + $0xa0] sm:$0xff] }
0x128a   :  { %4985 = vmatprep.subr.bf16.mxu0 %v5956_v42 }
0x130f   :  { %v2144_v4 = vpop.xlane.xlu0 %2143 }
0x1310   :  { %v2152_v8 = vmul.f32 0.0625, %v2144_v4  ;;  %v2141_v9 = vpop.xlane.xlu1 %2140 }
0x1311   :  { %v2151_v12 = vmul.f32 0.0625, %v2141_v9 }
0x1312   :  { %v5926_v16 = vsub.f32 %v2134_v58, %v2152_v8 }
0x1313   :  { %v5928_v17 = vsub.f32 %v2133_v57, %v2151_v12  ;;  %v2150_v19 = vpop.xlane.xlu0 %2149  ;;  %v4133_v57 = vld [vmem:[%s6174_s3 + $0xe] ss:$0 sm:$0xff] }
0x1314   :  { %v2154_v20 = vmul.f32 0.0625, %v2150_v19  ;;  %v2147_v6 = vpop.xlane.xlu1 %2146  ;;  %v2160_v21 = vmul.f32 %v5926_v16, %v5926_v16 }
0x1315   :  { %v2153_v23 = vmul.f32 0.0625, %v2147_v6  ;;  %v2159_v26 = vmul.f32 %v5928_v17, %v5928_v17 }
0x1316   :  { %v5934_v22 = vsub.f32 %v2136_v1, %v2154_v20  ;;  %v2166_v28 = vsel %vm45_vm0, %v2160_v21, 0.0 }
0x1317   :  { %v5937_v10 = vsub.f32 %v2135_v5, %v2153_v23  ;;  %2167 = vadd.xlane.f32.xlu0 %v2166_v28  ;;  %v2163_v7 = vsel %vm45_vm0, %v2159_v26, 0.0 }
0x1318   :  { %2164 = vadd.xlane.f32.xlu1 %v2163_v7  ;;  %v2162_v30 = vmul.f32 %v5934_v22, %v5934_v22 }
0x1319   :  { %v2161_v31 = vmul.f32 %v5937_v10, %v5937_v10 }
0x131a   :  { %v2172_v33 = vsel %vm45_vm0, %v2162_v30, 0.0 }
0x131b   :  { %2173 = vadd.xlane.f32.xlu0 %v2172_v33  ;;  %v2169_v34 = vsel %vm45_vm0, %v2161_v31, 0.0 }
0x131c   :  { %2170 = vadd.xlane.f32.xlu1 %v2169_v34 }
0x13a4   :  { %v2168_v50 = vpop.xlane.xlu0 %2167 }
0x13a5   :  { %v2176_v48 = vmul.f32 0.0625, %v2168_v50  ;;  %v2165_v51 = vpop.xlane.xlu1 %2164 }
0x13a6   :  { %v2175_v52 = vmul.f32 0.0625, %v2165_v51 }
0x13a7   :  { %v2180_v53 = vadd.f32 1e-05, %v2176_v48  ;;  %v2218_v48 = vld [vmem:[%s6172_s1 + $0xb8] sm:$0xff] }
0x13a8   :  { %v2179_v56 = vadd.f32 1e-05, %v2175_v52  ;;  %v2174_v18 = vpop.xlane.xlu0 %2173  ;;  %v2855_v52 = vand.u32 4294901760, %v2218_v48 }
0x13a9   :  { %5386 = vrsqrt.f32 %v2180_v53  ;;  %v2178_v59 = vmul.f32 0.0625, %v2174_v18  ;;  %v2171_v27 = vpop.xlane.xlu1 %2170  ;;  %v2961_v18 = vsub.f32 %v5971_v47, %v2843_v43 }
0x13aa   :  { %5388 = vrsqrt.f32 %v2179_v56  ;;  %v2177_v60 = vmul.f32 0.0625, %v2171_v27  ;;  %v2954_v56 = vsub.f32 %v5966_v46, %v2840_v54  ;;  %v2220_v27 = vld [vmem:[%s6172_s1 + $0xc8] sm:$0xff] }
0x13ab   :  { %v2182_v55 = vadd.f32 1e-05, %v2178_v59  ;;  %v2219_v59 = vld [vmem:[%s6172_s1 + $0xc0] sm:$0xff] }
0x13ac   :  { %v2181_v58 = vadd.f32 1e-05, %v2177_v60  ;;  %v2858_v60 = vand.u32 4294901760, %v2219_v59 }
0x13ad   :  { %5390 = vrsqrt.f32 %v2182_v55  ;;  %v2861_v55 = vand.u32 4294901760, %v2220_v27 }
0x13ae   :  { %5392 = vrsqrt.f32 %v2181_v58  ;;  %v2955_v58 = vand.u32 4294901760, %v2954_v56 }
0x13af   :  { %v6038_v46 = vpack.c.bf16 %v2861_v55, %v2858_v60 }
0x13b0   :  { %v2956_v54 = vsub.f32 %v2954_v56, %v2955_v58 }
0x13b3   :  { %v5387_v15 = vpop.eup %5386 }
0x13b4   :  { %v5389_v62 = vpop.eup %5388  ;;  %v2188_v2 = vmul.f32 %v5387_v15, %v5926_v16  ;;  %v2962_v15 = vand.u32 4294901760, %v2961_v18 }
0x13b5   :  { %v2187_v61 = vmul.f32 %v5389_v62, %v5928_v17  ;;  %v2957_v62 = vand.u32 4294901760, %v2956_v54 }
0x13b6   :  { %v2196_v0 = vmul.f32 %v4133_v57, %v2188_v2  ;;  %v2963_v47 = vsub.f32 %v2961_v18, %v2962_v15 }
0x13b7   :  { %v5391_v1 = vpop.eup %5390  ;;  %v2195_v5 = vmul.f32 %v4133_v57, %v2187_v61 }
0x13b8   :  { %v5393_v13 = vpop.eup %5392  ;;  %v2190_v3 = vmul.f32 %v5391_v1, %v5934_v22  ;;  %v2204_v4 = vadd.f32 %v4134_v63, %v2196_v0  ;;  %v2964_v2 = vand.u32 4294901760, %v2963_v47 }
0x13b9   :  { %v2189_v8 = vmul.f32 %v5393_v13, %v5937_v10  ;;  %v2203_v9 = vadd.f32 %v4134_v63, %v2195_v5  ;;  %v2989_v13 = vsub.f32 %v2218_v48, %v2855_v52 }
0x13ba   :  { %v2198_v12 = vmul.f32 %v4133_v57, %v2190_v3  ;;  %v2227_v19 = vsel %vm45_vm0, %v2204_v4, 0  ;;  %v6042_v0 = vpack.c.bf16 %v2964_v2, %v2957_v62 }
0x13bb   :  { %v2197_v16 = vmul.f32 %v4133_v57, %v2189_v8  ;;  %v2224_v17 = vsel %vm45_vm0, %v2203_v9, 0  ;;  %v2312_v20 = vand.u32 4294901760, %v2227_v19  ;;  %v2990_v9 = vand.u32 4294901760, %v2989_v13 }
0x13bc   :  { %v2302_v6 = vand.u32 4294901760, %v2224_v17  ;;  %v2206_v21 = vadd.f32 %v4134_v63, %v2198_v12 }
0x13bd   :  { %v2313_v23 = vsub.f32 %v2227_v19, %v2312_v20  ;;  %v2205_v26 = vadd.f32 %v4134_v63, %v2197_v16  ;;  %v2991_v16 = vsub.f32 %v2989_v13, %v2990_v9 }
0x13be   :  { %v2303_v28 = vsub.f32 %v2224_v17, %v2302_v6  ;;  %v2233_v7 = vsel %vm45_vm0, %v2206_v21, 0  ;;  %v2996_v17 = vsub.f32 %v2219_v59, %v2858_v60 }
0x13bf   :  { %v2314_v30 = vand.u32 4294901760, %v2313_v23  ;;  %v2230_v22 = vsel %vm45_vm0, %v2205_v26, 0  ;;  %v2332_v31 = vand.u32 4294901760, %v2233_v7 }
0x13c0   :  { %v2304_v10 = vand.u32 4294901760, %v2303_v28  ;;  %v2322_v33 = vand.u32 4294901760, %v2230_v22  ;;  %v2997_v26 = vand.u32 4294901760, %v2996_v17 }
0x13c1   :  { %v2315_v34 = vsub.f32 %v2313_v23, %v2314_v30  ;;  %v2333_v29 = vsub.f32 %v2233_v7, %v2332_v31 }
0x13c2   :  { %v2305_v36 = vsub.f32 %v2303_v28, %v2304_v10  ;;  %v2323_v32 = vsub.f32 %v2230_v22, %v2322_v33 }
0x13c3   :  { %v2334_v37 = vand.u32 4294901760, %v2333_v29  ;;  %v2316_v39 = vand.u32 4294901760, %v2315_v34  ;;  %v5036_v34 = vpack.c.bf16 %v2961_v18, %v2954_v56 }
0x13c4   :  { %v2306_v24 = vand.u32 4294901760, %v2305_v36  ;;  %v2324_v14 = vand.u32 4294901760, %v2323_v32 }
0x13c5   :  { %v2335_v35 = vsub.f32 %v2333_v29, %v2334_v37 }
0x13c6   :  { %4614 = vmatprep.mubr.f32.mxu0 %v2306_v24  ;;  %v2325_v11 = vsub.f32 %v2323_v32, %v2324_v14 }
0x13c7   :  { %4615 = vmatmul.mubr.f32.vlgmr.msra.gmra.mrb[34].mxu0 %v2316_v39  ;;  %v2336_v25 = vand.u32 4294901760, %v2335_v35  ;;  %v2210_v35 = vld [vmem:[%s6172_s1 + $0x68] sm:$0xff] }
0x13c8   :  { %4987 = vmatpush3.bf16.msra.mxu0 %v5956_v42  ;;  %v2326_v40 = vand.u32 4294901760, %v2325_v11  ;;  %v2216_v42 = vld [vmem:[%s6172_s1 + $0xa8] sm:$0xff]  ;;  %v2209_v11 = vld [vmem:[%s6172_s1 + $0x60] sm:$0xff] }
0x13c9   :  { %4989 = vmatprep.subr.bf16.mxu0 %v5959_v44 }
0x13ca   :  { %4617 = vmatprep.mubr.f32.mxu0 %v2326_v40 }
0x13cb   :  { %4618 = vmatmul.mubr.f32.gmra.mrb[36].mxu0 %v2336_v25 }
0x13cc   :  { %4624 = vmatprep.mubr.f32.mxu0 %v2302_v6 }
0x13cf   :  { %4625 = vmatmul.mubr.f32.vlgmr.msra.gmra.mrb[34].mxu0 %v2312_v20 }
0x13d0   :  { %4627 = vmatprep.mubr.f32.mxu0 %v2322_v33  ;;  %4991 = vmatpush3.bf16.msra.mxu0 %v5959_v44  ;;  %v2846_v44 = vand.u32 4294901760, %v2215_v41 }
0x13d1   :  { %4993 = vmatprep.subr.bf16.mxu0 %v5952_v38 }
0x13d2   :  { %v2968_v43 = vsub.f32 %v2215_v41, %v2846_v44 }
0x13d3   :  { %4628 = vmatmul.mubr.f32.gmra.mrb[36].mxu0 %v2332_v31 }
0x13d4   :  { %4634 = vmatprep.mubr.f32.mxu0 %v2303_v28  ;;  %v2969_v61 = vand.u32 4294901760, %v2968_v43 }
0x13d6   :  { %v2970_v1 = vsub.f32 %v2968_v43, %v2969_v61 }
0x13d7   :  { %4635 = vmatmul.mubr.f32.vlgmr.msra.gmra.mrb[34].mxu0 %v2313_v23  ;;  %v2992_v23 = vand.u32 4294901760, %v2991_v16 }
0x13d8   :  { %4637 = vmatprep.mubr.f32.mxu0 %v2323_v32  ;;  %4995 = vmatpush3.bf16.msra.mxu0 %v5952_v38  ;;  %v2971_v4 = vand.u32 4294901760, %v2970_v1 }
0x13d9   :  { %4997 = vmatprep.subr.bf16.mxu0 %v5961_v45 }
0x13db   :  { %4638 = vmatmul.mubr.f32.gmra.mrb[36].mxu0 %v2333_v29 }
0x13dc   :  { %4644 = vmatprep.mubr.f32.mxu0 %v2304_v10 }
0x13df   :  { %4645 = vmatmul.mubr.f32.vlgmr.msra.gmra.mrb[34].mxu0 %v2314_v30  ;;  %v2998_v30 = vsub.f32 %v2996_v17, %v2997_v26 }
0x13e0   :  { %4647 = vmatprep.mubr.f32.mxu0 %v2324_v14  ;;  %4999 = vmatpush3.bf16.msra.mxu0 %v5961_v45  ;;  %v2849_v45 = vand.u32 4294901760, %v2216_v42 }
0x13e1   :  { %5001 = vmatprep.subr.bf16.mxu0 %v5952_v38 }
0x13e2   :  { %v6012_v50 = vpack.c.bf16 %v2849_v45, %v2846_v44  ;;  %v2975_v57 = vsub.f32 %v2216_v42, %v2849_v45  ;;  %v2212_v44 = vld [vmem:[%s6172_s1 + $0x78] sm:$0xff] }
0x13e3   :  { %4648 = vmatmul.mubr.f32.gmra.mrb[36].mxu0 %v2334_v37  ;;  %v6047_v37 = vpack.c.bf16 %v2962_v15, %v2955_v58 }
0x13e4   :  { %4654 = vmatprep.mubr.f32.mxu0 %v2302_v6  ;;  %5009 = vmatprep.subr.bf16.mxu1 %v6012_v50  ;;  %v2976_v63 = vand.u32 4294901760, %v2975_v57  ;;  %v5040_v29 = vpack.c.bf16 %v2975_v57, %v2968_v43 }
0x13e5   :  { %5011 = vmatpush3.bf16.msra.mxu1 %v6012_v50 }
0x13e6   :  { %v2977_v3 = vsub.f32 %v2975_v57, %v2976_v63  ;;  %v6049_v24 = vpack.c.bf16 %v2976_v63, %v2969_v61 }
0x13e7   :  { %4655 = vmatmul.mubr.f32.vlgmr.msra.gmra.mrb[34].mxu0 %v2312_v20 }
0x13e8   :  { %4657 = vmatprep.mubr.f32.mxu0 %v2322_v33  ;;  %5003 = vmatpush3.bf16.msra.mxu0 %v5952_v38  ;;  %v2217_v38 = vld [vmem:[%s6172_s1 + $0xb0] sm:$0xff]  ;;  %v2978_v12 = vand.u32 4294901760, %v2977_v3 }
0x13e9   :  { %v2852_v51 = vand.u32 4294901760, %v2217_v38 }
0x13eb   :  { %4658 = vmatmul.mubr.f32.gmra.mrb[36].mxu0 %v2332_v31  ;;  %v6022_v53 = vpack.c.bf16 %v2855_v52, %v2852_v51  ;;  %v2982_v5 = vsub.f32 %v2217_v38, %v2852_v51  ;;  %v2211_v38 = vld [vmem:[%s6172_s1 + $0x70] sm:$0xff] }
0x13ec   :  { %4664 = vmatprep.mubr.f32.mxu0 %v2302_v6  ;;  %v5024_v6 = vpack.c.bf16 %v2978_v12, %v2971_v4 }
0x13ed   :  { %5013 = vmatprep.subr.bf16.mxu1 %v6022_v53  ;;  %v2983_v8 = vand.u32 4294901760, %v2982_v5  ;;  %v5044_v36 = vpack.c.bf16 %v2989_v13, %v2982_v5 }
0x13ee   :  { %5015 = vmatpush3.bf16.msra.mxu1 %v6022_v53 }
0x13ef   :  { %4665 = vmatmul.mubr.f32.vlgmr.msra.gmra.mrb[34].mxu0 %v2312_v20  ;;  %5017 = vmatprep.subr.bf16.mxu1 %v6038_v46  ;;  %v2984_v19 = vsub.f32 %v2982_v5, %v2983_v8  ;;  %v3003_v20 = vsub.f32 %v2220_v27, %v2861_v55  ;;  %v6051_v14 = vpack.c.bf16 %v2990_v9, %v2983_v8 }
0x13f0   :  { %4667 = vmatprep.mubr.f32.mxu0 %v2322_v33 }
0x13f1   :  { %v2985_v21 = vand.u32 4294901760, %v2984_v19  ;;  %v3004_v28 = vand.u32 4294901760, %v3003_v20  ;;  %v6045_v32 = vpack.c.bf16 %v3003_v20, %v2996_v17 }
0x13f2   :  { %5019 = vmatpush3.bf16.msra.mxu1 %v6038_v46 }
0x13f3   :  { %4668 = vmatmul.mubr.f32.gmra.mrb[36].mxu0 %v2332_v31  ;;  %5021 = vmatprep.subr.bf16.mxu1 %v6042_v0  ;;  %v5028_v7 = vpack.c.bf16 %v2992_v23, %v2985_v21  ;;  %v3005_v22 = vsub.f32 %v3003_v20, %v3004_v28  ;;  %v2999_v31 = vand.u32 4294901760, %v2998_v30  ;;  %v6053_v39 = vpack.c.bf16 %v3004_v28, %v2997_v26 }
0x13f5   :  { %v3006_v10 = vand.u32 4294901760, %v3005_v22 }
0x13f7   :  { %v5032_v33 = vpack.c.bf16 %v3006_v10, %v2999_v31 }
0x14c2   :  { %v4666_v40 = vpop.f32.mrb[34].mxu0 }
0x14c3   :  { %v2824_v25 = vmul.f32 %v4666_v40, %v2210_v35  ;;  %v2801_v41 = vpop.f32.mrb[35].mxu0 }
0x14c4   :  { %v2823_v42 = vmul.f32 %v2801_v41, %v2209_v11 }
0x14c5   :  { %v2831_v45 = vsel %vm309_vm3, %v2824_v25, 0 }
0x14c6   :  { %v6068_v48 = vand.u32 4294901760, %v2831_v45  ;;  %v2828_v51 = vsel %vm309_vm3, %v2823_v42, 0  ;;  %v4669_v52 = vpop.f32.mrb[36].mxu0 }
0x14c7   :  { %v6071_v56 = vand.u32 4294901760, %v2828_v51  ;;  %v2826_v18 = vmul.f32 %v4669_v52, %v2212_v44  ;;  %v2813_v59 = vpop.f32.mrb[37].mxu0 }
0x14c8   :  { %v2923_v27 = vsub.f32 %v2831_v45, %v6068_v48  ;;  %v2825_v60 = vmul.f32 %v2813_v59, %v2211_v38 }
0x14c9   :  { %v2913_v55 = vsub.f32 %v2828_v51, %v6071_v56  ;;  %v2837_v58 = vsel %vm309_vm3, %v2826_v18, 0  ;;  %v4135_v18 = vld [vmem:[%s6172_s1 + $0xd8] ss:$0 sm:$0xff] }
0x14ca   :  { %v2924_v15 = vand.u32 4294901760, %v2923_v27  ;;  %v6076_v54 = vand.u32 4294901760, %v2837_v58  ;;  %v2834_v47 = vsel %vm309_vm3, %v2825_v60, 0 }
0x14cb   :  { %v6079_v43 = vand.u32 4294901760, %v2834_v47  ;;  %v2914_v57 = vand.u32 4294901760, %v2913_v55 }
0x14cc   :  { %v2925_v62 = vsub.f32 %v2923_v27, %v2924_v15  ;;  %v2943_v2 = vsub.f32 %v2837_v58, %v6076_v54 }
0x14cd   :  { %v2933_v61 = vsub.f32 %v2834_v47, %v6079_v43  ;;  %v2915_v63 = vsub.f32 %v2913_v55, %v2914_v57 }
0x14ce   :  { %v2944_v1 = vand.u32 4294901760, %v2943_v2  ;;  %v2926_v3 = vand.u32 4294901760, %v2925_v62 }
0x14cf   :  { %v2916_v5 = vand.u32 4294901760, %v2915_v63  ;;  %v2934_v13 = vand.u32 4294901760, %v2933_v61 }
0x14d0   :  { %v2945_v4 = vsub.f32 %v2943_v2, %v2944_v1 }
0x14d1   :  { %4686 = vmatprep.mubr.f32.mxu1 %v2916_v5  ;;  %v2935_v8 = vsub.f32 %v2933_v61, %v2934_v13 }
0x14d2   :  { %4687 = vmatmul.mubr.f32.vlgmr.msra.gmra.mrb[30].mxu1 %v2926_v3  ;;  %v2946_v12 = vand.u32 4294901760, %v2945_v4 }
0x14d3   :  { %5023 = vmatpush3.bf16.msra.mxu1 %v6042_v0  ;;  %v2936_v9 = vand.u32 4294901760, %v2935_v8 }
0x14d4   :  { %5025 = vmatprep.subr.bf16.mxu1 %v5024_v6 }
0x14d5   :  { %4689 = vmatprep.mubr.f32.mxu1 %v2936_v9 }
0x14d6   :  { %4690 = vmatmul.mubr.f32.gmra.mrb[32].mxu1 %v2946_v12 }
0x14d7   :  { %5027 = vmatpush3.bf16.msra.mxu1 %v5024_v6  ;;  %4708 = vmatprep.mubr.f32.mxu1 %v6071_v56 }
0x14d8   :  { %5029 = vmatprep.subr.bf16.mxu1 %v5028_v7 }
0x14db   :  { %5031 = vmatpush3.bf16.msra.mxu1 %v5028_v7 }
0x14dc   :  { %5033 = vmatprep.subr.bf16.mxu1 %v5032_v33 }
0x14df   :  { %5035 = vmatpush3.bf16.msra.mxu1 %v5032_v33 }
0x14e0   :  { %5037 = vmatprep.subr.bf16.mxu1 %v5036_v34 }
0x14e2   :  { %4709 = vmatmul.mubr.f32.vlgmr.msra.gmra.mrb[30].mxu1 %v6068_v48 }
0x14e3   :  { %4711 = vmatprep.mubr.f32.mxu1 %v6079_v43  ;;  %5039 = vmatpush3.bf16.msra.mxu1 %v5036_v34 }
0x14e4   :  { %5041 = vmatprep.subr.bf16.mxu1 %v5040_v29 }
0x14e6   :  { %4712 = vmatmul.mubr.f32.gmra.mrb[32].mxu1 %v6076_v54 }
0x14e7   :  { %5043 = vmatpush3.bf16.msra.mxu1 %v5040_v29  ;;  %4730 = vmatprep.mubr.f32.mxu1 %v2913_v55 }
0x14e8   :  { %5045 = vmatprep.subr.bf16.mxu1 %v5044_v36 }
0x14eb   :  { %5047 = vmatpush3.bf16.msra.mxu1 %v5044_v36 }
0x14ec   :  { %5049 = vmatprep.subr.bf16.mxu1 %v6045_v32 }
0x14ef   :  { %5051 = vmatpush3.bf16.msra.mxu1 %v6045_v32 }
0x14f0   :  { %5053 = vmatprep.subr.bf16.mxu1 %v5979_v49 }
0x14f2   :  { %4731 = vmatmul.mubr.f32.vlgmr.msra.gmra.mrb[30].mxu1 %v2923_v27 }
0x14f3   :  { %4733 = vmatprep.mubr.f32.mxu1 %v2933_v61  ;;  %5055 = vmatpush3.bf16.msra.mxu1 %v5979_v49 }
0x14f4   :  { %5057 = vmatprep.subr.bf16.mxu1 %v6012_v50 }
0x14f6   :  { %4734 = vmatmul.mubr.f32.gmra.mrb[32].mxu1 %v2943_v2 }
0x14f7   :  { %5059 = vmatpush3.bf16.msra.mxu1 %v6012_v50  ;;  %4752 = vmatprep.mubr.f32.mxu1 %v2914_v57 }
0x14f8   :  { %5061 = vmatprep.subr.bf16.mxu1 %v6022_v53 }
0x14fb   :  { %5063 = vmatpush3.bf16.msra.mxu1 %v6022_v53 }
0x14fc   :  { %5065 = vmatprep.subr.bf16.mxu1 %v6038_v46 }
0x14ff   :  { %5067 = vmatpush3.bf16.msra.mxu1 %v6038_v46 }
0x1500   :  { %5069 = vmatprep.subr.bf16.mxu1 %v6047_v37 }
0x1502   :  { %4753 = vmatmul.mubr.f32.vlgmr.msra.gmra.mrb[30].mxu1 %v2924_v15 }
0x1503   :  { %4755 = vmatprep.mubr.f32.mxu1 %v2934_v13  ;;  %5071 = vmatpush3.bf16.msra.mxu1 %v6047_v37 }
0x1504   :  { %5073 = vmatprep.subr.bf16.mxu1 %v6049_v24 }
0x1506   :  { %4756 = vmatmul.mubr.f32.gmra.mrb[32].mxu1 %v2944_v1 }
0x1507   :  { %5075 = vmatpush3.bf16.msra.mxu1 %v6049_v24  ;;  %4774 = vmatprep.mubr.f32.mxu1 %v6071_v56 }
0x1508   :  { %5077 = vmatprep.subr.bf16.mxu1 %v6051_v14 }
0x150b   :  { %5079 = vmatpush3.bf16.msra.mxu1 %v6051_v14 }
0x150c   :  { %5081 = vmatprep.subr.bf16.mxu1 %v6053_v39 }
0x150f   :  { %5083 = vmatpush3.bf16.msra.mxu1 %v6053_v39 }
0x1510   :  { %5085 = vmatprep.subr.bf16.mxu1 %v5979_v49 }
0x1512   :  { %4775 = vmatmul.mubr.f32.vlgmr.msra.gmra.mrb[30].mxu1 %v6068_v48 }
0x1513   :  { %4777 = vmatprep.mubr.f32.mxu1 %v6079_v43  ;;  %5087 = vmatpush3.bf16.msra.mxu1 %v5979_v49  ;;  %v5421_v49 = vmov 0.0|0.0  }
0x1514   :  { %5089 = vmatprep.subr.bf16.mxu1 %v6012_v50  ;;  %5100 = vmatprep.subr.bf16.mxu0 %v5421_v49 }
0x1516   :  { %4778 = vmatmul.mubr.f32.gmra.mrb[32].mxu1 %v6076_v54 }
0x1517   :  { %5091 = vmatpush3.bf16.msra.mxu1 %v6012_v50  ;;  %4796 = vmatprep.mubr.f32.mxu1 %v6071_v56  ;;  %v5423_v50 = vmov 0.0  }
0x1518   :  { %5093 = vmatprep.subr.bf16.mxu1 %v6022_v53  ;;  %4810 = vmatprep.mubr.msk.f32.mxu0 %vm5422_vm5, %v5423_v50 }
0x151b   :  { %5095 = vmatpush3.bf16.msra.mxu1 %v6022_v53  ;;  %v2221_v53 = vld [vmem:[%s6172_s1 + $0xd0] sm:$0xf] }
0x151c   :  { %5097 = vmatprep.subr.bf16.mxu1 %v6038_v46 }
0x151f   :  { %5099 = vmatpush3.bf16.msra.mxu1 %v6038_v46  ;;  %v3510_v46 = vsel %vm952_vm4, %v2221_v53, 0 }
0x1520   :  { %v6129_v0 = vand.u32 4294901760, %v3510_v46 }
0x1522   :  { %4797 = vmatmul.mubr.f32.vlgmr.msra.gmra.mrb[30].mxu1 %v6068_v48  ;;  %v3582_v19 = vsub.f32 %v3510_v46, %v6129_v0 }
0x1523   :  { %4799 = vmatprep.mubr.f32.mxu1 %v6079_v43 }
0x1524   :  { %v3583_v6 = vand.u32 4294901760, %v3582_v19 }
0x1526   :  { %4800 = vmatmul.mubr.f32.gmra.mrb[32].mxu1 %v6076_v54  ;;  %v3584_v10 = vsub.f32 %v3582_v19, %v3583_v6 }
0x1528   :  { %v3585_v40 = vand.u32 4294901760, %v3584_v10 }
0x15f5   :  { %v4798_v16 = vpop.f32.mrb[30].mxu1 }
0x15f6   :  { %v3516_v17 = vand.u32 4294901760, %v4798_v16  ;;  %v3483_v20 = vpop.f32.mrb[31].mxu1 }
0x15f7   :  { %v3513_v21 = vand.u32 4294901760, %v3483_v20 }
0x15f8   :  { %v3600_v23 = vsub.f32 %v4798_v16, %v3516_v17 }
0x15f9   :  { %v5101_v26 = vpack.c.bf16 %v3516_v17, %v3513_v21  ;;  %v3593_v28 = vsub.f32 %v3483_v20, %v3513_v21  ;;  %v4801_v7 = vpop.f32.mrb[32].mxu1 }
0x15fa   :  { %v3601_v30 = vand.u32 4294901760, %v3600_v23  ;;  %v3522_v22 = vand.u32 4294901760, %v4801_v7  ;;  %v3495_v31 = vpop.f32.mrb[33].mxu1 }
0x15fb   :  { %v3594_v33 = vand.u32 4294901760, %v3593_v28  ;;  %v5113_v34 = vpack.c.bf16 %v3600_v23, %v3593_v28  ;;  %v3519_v29 = vand.u32 4294901760, %v3495_v31  ;;  %5102 = vmatpush3.bf16.msra.mxu0 %v5101_v26 }
0x15fc   :  { %v3602_v36 = vsub.f32 %v3600_v23, %v3601_v30  ;;  %v3614_v32 = vsub.f32 %v4801_v7, %v3522_v22  ;;  %5103 = vmatprep.subr.bf16.mxu0 %v5421_v49 }
0x15fd   :  { %v3595_v37 = vsub.f32 %v3593_v28, %v3594_v33  ;;  %v5104_v24 = vpack.c.bf16 %v3522_v22, %v3519_v29  ;;  %v3607_v14 = vsub.f32 %v3495_v31, %v3519_v29  ;;  %v5125_v39 = vpack.c.bf16 %v3601_v30, %v3594_v33 }
0x15fe   :  { %v3603_v35 = vand.u32 4294901760, %v3602_v36  ;;  %v3615_v11 = vand.u32 4294901760, %v3614_v32 }
0x15ff   :  { %v3596_v25 = vand.u32 4294901760, %v3595_v37  ;;  %v3608_v41 = vand.u32 4294901760, %v3607_v14  ;;  %v5116_v42 = vpack.c.bf16 %v3614_v32, %v3607_v14  ;;  %5105 = vmatpush3.bf16.msra.mxu0 %v5104_v24 }
0x1600   :  { %v3616_v44 = vsub.f32 %v3614_v32, %v3615_v11  ;;  %5106 = vmatprep.subr.bf16.mxu0 %v5421_v49 }
0x1601   :  { %v3609_v45 = vsub.f32 %v3607_v14, %v3608_v41  ;;  %v5128_v38 = vpack.c.bf16 %v3615_v11, %v3608_v41  ;;  %v5107_v48 = vpack.c.bf16 %v3603_v35, %v3596_v25 }
0x1602   :  { %v3617_v51 = vand.u32 4294901760, %v3616_v44  ;;  %4811 = vmatmul.mubr.f32.vlgmr.msra.gmra.mrb[38].mxu0 %v3585_v40 }
0x1603   :  { %v3610_v52 = vand.u32 4294901760, %v3609_v45  ;;  %5108 = vmatpush3.bf16.msra.mxu0 %v5107_v48  ;;  %4821 = vmatprep.mubr.msk.f32.mxu0 %vm5422_vm5, %v5423_v50 }
0x1604   :  { %5109 = vmatprep.subr.bf16.mxu0 %v5421_v49 }
0x1605   :  { %v5110_v56 = vpack.c.bf16 %v3617_v51, %v3610_v52 }
0x1607   :  { %5111 = vmatpush3.bf16.msra.mxu0 %v5110_v56 }
0x1608   :  { %5112 = vmatprep.subr.bf16.mxu0 %v5421_v49 }
0x160a   :  { %4822 = vmatmul.mubr.f32.vlgmr.msra.gmra.mrb[38].mxu0 %v6129_v0 }
0x160b   :  { %5114 = vmatpush3.bf16.msra.mxu0 %v5113_v34  ;;  %4832 = vmatprep.mubr.msk.f32.mxu0 %vm5422_vm5, %v5423_v50 }
0x160c   :  { %5115 = vmatprep.subr.bf16.mxu0 %v5421_v49 }
0x160f   :  { %5117 = vmatpush3.bf16.msra.mxu0 %v5116_v42 }
0x1610   :  { %5118 = vmatprep.subr.bf16.mxu0 %v5421_v49 }
0x1612   :  { %4833 = vmatmul.mubr.f32.vlgmr.msra.gmra.mrb[38].mxu0 %v3582_v19 }
0x1613   :  { %5120 = vmatpush3.bf16.msra.mxu0 %v5101_v26  ;;  %4843 = vmatprep.mubr.msk.f32.mxu0 %vm5422_vm5, %v5423_v50 }
0x1614   :  { %5121 = vmatprep.subr.bf16.mxu0 %v5421_v49 }
0x1617   :  { %5123 = vmatpush3.bf16.msra.mxu0 %v5104_v24 }
0x1618   :  { %5124 = vmatprep.subr.bf16.mxu0 %v5421_v49 }
0x161a   :  { %4844 = vmatmul.mubr.f32.vlgmr.msra.gmra.mrb[38].mxu0 %v3583_v6 }
0x161b   :  { %5126 = vmatpush3.bf16.msra.mxu0 %v5125_v39  ;;  %4854 = vmatprep.mubr.msk.f32.mxu0 %vm5422_vm5, %v5423_v50 }
0x161c   :  { %5127 = vmatprep.subr.bf16.mxu0 %v5421_v49 }
0x161f   :  { %5129 = vmatpush3.bf16.msra.mxu0 %v5128_v38 }
0x1620   :  { %5130 = vmatprep.subr.bf16.mxu0 %v5421_v49 }
0x1622   :  { %4855 = vmatmul.mubr.f32.vlgmr.msra.gmra.mrb[38].mxu0 %v6129_v0 }
0x1623   :  { %5132 = vmatpush3.bf16.msra.mxu0 %v5101_v26  ;;  %4865 = vmatprep.mubr.msk.f32.mxu0 %vm5422_vm5, %v5423_v50 }
0x1624   :  { %5133 = vmatprep.subr.bf16.mxu0 %v5421_v49 }
0x1627   :  { %5135 = vmatpush3.bf16.msra.mxu0 %v5104_v24 }
0x162a   :  { %4866 = vmatmul.mubr.f32.vlgmr.msra.gmra.mrb[38].mxu0 %v6129_v0 }
0x16fd   :  { %v3993_v59 = vpop.f32.mrb[38].mxu0 }
0x16fe   :  { %v5152_v27 = vadd.f32 %v4135_v18, %v3993_v59  ;;  %v4867_v60 = vpop.f32.mrb[39].mxu0 }
0x1700   :  { %3998 = vst.msk [vmem:[#allocation2] sm:$0xf] %vm3997_vm6, %v5152_v27 }
0x1701   :  { %5405 = shalt.err (!%p5402_p4)
}
0x1702   :  { %s5406_s3 = scalar_lea.hbm %s6175_s4, 64 }
0x1703   :  { %p5407_p5 = scmp.ne.s32.totalorder %s6175_s4, %s5406_s3  ;;  %p5410_p6 = scmp.lt.u32.totalorder %s5406_s3, %s6175_s4 }
0x1705   :  { %p5412_p7 = pnand %p5410_p6, %p5407_p5 }
0x1707   :  { %5415 = shalt.err (!%p5412_p7)
}
0x1708   :  { %4008 = dma.vmem_to_hbm [thread:$0]  %s4006_s19, 64, %s6175_s4, [#allocation3]  }
0x1709   :  { %5416 = dma.done.wait [#allocation3], 64  }
0x170a   :  { %5417 = vsyncadd [#allocation3], 4294967232 }
0x170b   :  { %4012 = vsyncpa [#allocation3], 1 }

</bundles_post_ra>
